<compile_context>
chip_gen: v7x
topology: tpu7x:2x2x1
jax: 0.10.0
libtpu: 0.0.40
codegen_flags: <defaults>
</compile_context>

<pallas_src>
import math
from functools import partial

import jax
import jax.numpy as jnp
from jax.experimental import pallas as pl
from jax.experimental.pallas import tpu as pltpu

BN_EPS = 1e-5
LN_EPS = 1e-5


# ----------------------------------------------------------------------------
# In-kernel helpers (traced inside kernel bodies)
# ----------------------------------------------------------------------------
def _ln(x, g, b):
    mu = jnp.mean(x, axis=-1, keepdims=True)
    var = jnp.mean((x - mu) ** 2, axis=-1, keepdims=True)
    return (x - mu) * jax.lax.rsqrt(var + LN_EPS) * g + b


def _attn(x_q, x_kv, w3_ref, b3_ref, wo, bo, scale):
    # w3_ref: (3, D, D) packed q/k/v weights stored [in, out]; b3_ref: (3, 1, D)
    q = jnp.dot(x_q, w3_ref[0], preferred_element_type=jnp.float32) + b3_ref[0]
    k = jnp.dot(x_kv, w3_ref[1], preferred_element_type=jnp.float32) + b3_ref[1]
    v = jnp.dot(x_kv, w3_ref[2], preferred_element_type=jnp.float32) + b3_ref[2]
    s = jax.lax.dot_general(q, k, (((1,), (1,)), ((), ())),
                            preferred_element_type=jnp.float32) * scale
    s = s - jnp.max(s, axis=-1, keepdims=True)
    p = jnp.exp(s)
    p = p * pl.reciprocal(jnp.sum(p, axis=-1, keepdims=True), approx=True)
    a = jnp.dot(p, v, preferred_element_type=jnp.float32)
    return jnp.dot(a, wo, preferred_element_type=jnp.float32) + bo


# ----------------------------------------------------------------------------
# Kernels
# ----------------------------------------------------------------------------
def _in_proj_kernel(x_ref, w1_ref, b1_ref, g1_ref, be1_ref,
                    w2_ref, b2_ref, g2_ref, be2_ref, o_ref):
    # Conv1d(k=1) -> BN -> ReLU -> Conv1d(k=1) -> BN, channels-last [B*T, C].
    x = x_ref[...]
    inv_m = 1.0 / x.shape[0]
    h = jnp.dot(x, w1_ref[...], preferred_element_type=jnp.float32) + b1_ref[...]
    mu1 = jnp.sum(h, axis=0, keepdims=True) * inv_m          # one-pass stats
    var1 = jnp.sum(h * h, axis=0, keepdims=True) * inv_m - mu1 * mu1
    h = (h - mu1) * jax.lax.rsqrt(var1 + BN_EPS) * g1_ref[...] + be1_ref[...]
    h = jnp.maximum(h, 0.0)
    y = jnp.dot(h, w2_ref[...], preferred_element_type=jnp.float32) + b2_ref[...]
    mu2 = jnp.sum(y, axis=0, keepdims=True) * inv_m
    var2 = jnp.sum(y * y, axis=0, keepdims=True) * inv_m - mu2 * mu2
    o_ref[...] = (y - mu2) * jax.lax.rsqrt(var2 + BN_EPS) * g2_ref[...] + be2_ref[...]


def _encoder_layer_kernel(x_ref, saw_ref, sab_ref, sawo_ref, sabo_ref,
                          g1_ref, b1_ref, w1_ref, fb1_ref, w2_ref, fb2_ref,
                          g2_ref, b2_ref, o_ref, *, scale):
    x = x_ref[0]                                              # (T, D)
    a = _attn(x, x, saw_ref, sab_ref, sawo_ref[...], sabo_ref[...], scale)
    y = _ln(x + a, g1_ref[...], b1_ref[...])
    f = jnp.maximum(
        jnp.dot(y, w1_ref[...], preferred_element_type=jnp.float32) + fb1_ref[...],
        0.0)
    f = jnp.dot(f, w2_ref[...], preferred_element_type=jnp.float32) + fb2_ref[...]
    o_ref[0] = _ln(y + f, g2_ref[...], b2_ref[...])


def _decoder_layer_kernel(tgt_ref, mem_ref,
                          saw_ref, sab_ref, sawo_ref, sabo_ref, g1_ref, b1_ref,
                          caw_ref, cab_ref, cawo_ref, cabo_ref, g2_ref, b2_ref,
                          w1_ref, fb1_ref, w2_ref, fb2_ref, g3_ref, b3_ref,
                          o_ref, *, scale):
    tg = tgt_ref[0]                                           # (NQ, D)
    mem = mem_ref[0]                                          # (T, D)
    a = _attn(tg, tg, saw_ref, sab_ref, sawo_ref[...], sabo_ref[...], scale)
    t1 = _ln(tg + a, g1_ref[...], b1_ref[...])
    a2 = _attn(t1, mem, caw_ref, cab_ref, cawo_ref[...], cabo_ref[...], scale)
    t2 = _ln(t1 + a2, g2_ref[...], b2_ref[...])
    f = jnp.maximum(
        jnp.dot(t2, w1_ref[...], preferred_element_type=jnp.float32) + fb1_ref[...],
        0.0)
    f = jnp.dot(f, w2_ref[...], preferred_element_type=jnp.float32) + fb2_ref[...]
    o_ref[0] = _ln(t2 + f, g3_ref[...], b3_ref[...])


def _layernorm_kernel(x_ref, g_ref, b_ref, o_ref):
    o_ref[...] = _ln(x_ref[...], g_ref[...], b_ref[...])


def _head_kernel(q1_ref, wt_ref, rb_ref, w_ref, out_ref):
    # diag[b,q] = sum_d q1[b,q,d] * W[q,d] + bias[q]  (regressor diagonal only),
    # then sigmoid -> normalize -> weighted sum.
    q1 = q1_ref[...]                                          # (B, NQ, D)
    wt = wt_ref[...]                                          # (NQ, D)
    diag = jnp.sum(q1 * wt[None, :, :], axis=-1) + rb_ref[...]   # (B, NQ)
    sig = pl.reciprocal(1.0 + jnp.exp(-diag), approx=True)
    norm = sig * pl.reciprocal(jnp.sum(sig, axis=1, keepdims=True), approx=True)
    out_ref[...] = jnp.sum(w_ref[...] * norm, axis=1, keepdims=True)  # (B, 1)


# ----------------------------------------------------------------------------
# Pallas-call wrappers
# ----------------------------------------------------------------------------
def _const_spec(shape):
    zeros = (0,) * len(shape)
    return pl.BlockSpec(shape, lambda i: zeros)


def in_proj(x2d, ip):
    m = x2d.shape[0]
    hdim = ip["w2t"].shape[1]
    return pl.pallas_call(
        _in_proj_kernel,
        out_shape=jax.ShapeDtypeStruct((m, hdim), jnp.float32),
    )(x2d, ip["w1t"], ip["b1"], ip["g1"], ip["be1"],
      ip["w2t"], ip["b2"], ip["g2"], ip["be2"])


def layernorm(x, g, b):
    m, d = x.shape
    return pl.pallas_call(
        _layernorm_kernel,
        out_shape=jax.ShapeDtypeStruct((m, d), jnp.float32),
    )(x, g, b)


def encoder_layer(p, x):
    b, t, d = x.shape
    scale = 1.0 / math.sqrt(d)
    args = (x, p["sa_w"], p["sa_b"], p["sa_wo"], p["sa_bo"],
            p["ln1_g"], p["ln1_b"], p["w1"], p["b1"], p["w2"], p["b2"],
            p["ln2_g"], p["ln2_b"])
    tok_spec = pl.BlockSpec((1, t, d), lambda i: (i, 0, 0))
    in_specs = [tok_spec] + [_const_spec(a.shape) for a in args[1:]]
    return pl.pallas_call(
        partial(_encoder_layer_kernel, scale=scale),
        grid=(b,),
        in_specs=in_specs,
        out_specs=tok_spec,
        out_shape=jax.ShapeDtypeStruct((b, t, d), jnp.float32),
        compiler_params=pltpu.CompilerParams(dimension_semantics=("parallel",)),
    )(*args)


def decoder_layer(p, tgt, memory):
    b, nq, d = tgt.shape
    t = memory.shape[1]
    scale = 1.0 / math.sqrt(d)
    args = (tgt, memory,
            p["sa_w"], p["sa_b"], p["sa_wo"], p["sa_bo"], p["ln1_g"], p["ln1_b"],
            p["ca_w"], p["ca_b"], p["ca_wo"], p["ca_bo"], p["ln2_g"], p["ln2_b"],
            p["w1"], p["b1"], p["w2"], p["b2"], p["ln3_g"], p["ln3_b"])
    tgt_spec = pl.BlockSpec((1, nq, d), lambda i: (i, 0, 0))
    mem_spec = pl.BlockSpec((1, t, d), lambda i: (i, 0, 0))
    in_specs = [tgt_spec, mem_spec] + [_const_spec(a.shape) for a in args[2:]]
    return pl.pallas_call(
        partial(_decoder_layer_kernel, scale=scale),
        grid=(b,),
        in_specs=in_specs,
        out_specs=tgt_spec,
        out_shape=jax.ShapeDtypeStruct((b, nq, d), jnp.float32),
        compiler_params=pltpu.CompilerParams(dimension_semantics=("parallel",)),
    )(*args)


def score_head(q1, reg_w, reg_b, weight):
    b = q1.shape[0]
    return pl.pallas_call(
        _head_kernel,
        out_shape=jax.ShapeDtypeStruct((b, 1), jnp.float32),
    )(q1, reg_w, reg_b, weight)


# ----------------------------------------------------------------------------
# Forward pass
# ----------------------------------------------------------------------------
def gdlt_forward(params, x):
    b, t, c = x.shape
    nq, h = params["prototype"].shape

    # in_proj: token-wise MLP with BatchNorm (channels-last, flattened tokens)
    xt = in_proj(x.reshape(-1, c), params["in_proj"]).reshape(b, t, h)

    # encoder (+ final LayerNorm, as in nn.Transformer)
    enc = xt
    for lp in params["encoder"]:
        enc = encoder_layer(lp, enc)
    enc = layernorm(enc.reshape(-1, h),
                    params["encoder_norm"]["g"],
                    params["encoder_norm"]["b"]).reshape(b, t, h)

    # decoder over learned prototypes (+ final LayerNorm)
    tgt = jnp.broadcast_to(params["prototype"][None], (b, nq, h))
    for lp in params["decoder"]:
        tgt = decoder_layer(lp, tgt, enc)
    q1 = layernorm(tgt.reshape(-1, h),
                   params["decoder_norm"]["g"],
                   params["decoder_norm"]["b"]).reshape(b, nq, h)

    # regressor diagonal -> sigmoid -> normalize -> weighted sum
    out = score_head(q1, params["regressor_w"], params["regressor_b"],
                     params["weight"])[:, 0]                  # (B,)
    return out, q1


# ----------------------------------------------------------------------------
# Deterministic parameter init (projection weights stored [in, out];
# regressor stored in PyTorch nn.Linear layout [n_query, hidden])
# ----------------------------------------------------------------------------
def init_params(key, in_dim, hidden, ffn, n_query, n_enc, n_dec, score_range=1.0):
    keys = iter(jax.random.split(key, 512))

    def w(shape, scale=0.1):
        return scale * jax.random.normal(next(keys), shape, jnp.float32)

    def ones(shape):
        return jnp.ones(shape, jnp.float32)

    def zeros(shape):
        return jnp.zeros(shape, jnp.float32)

    mid = in_dim // 2

    def attn_params():
        return dict(w=w((3, hidden, hidden)), b=w((3, 1, hidden), 0.02),
                    wo=w((hidden, hidden)), bo=w((1, hidden), 0.02))

    def enc_layer():
        sa = attn_params()
        return dict(sa_w=sa["w"], sa_b=sa["b"], sa_wo=sa["wo"], sa_bo=sa["bo"],
                    ln1_g=ones((1, hidden)), ln1_b=zeros((1, hidden)),
                    w1=w((hidden, ffn)), b1=w((1, ffn), 0.02),
                    w2=w((ffn, hidden)), b2=w((1, hidden), 0.02),
                    ln2_g=ones((1, hidden)), ln2_b=zeros((1, hidden)))

    def dec_layer():
        sa = attn_params()
        ca = attn_params()
        return dict(sa_w=sa["w"], sa_b=sa["b"], sa_wo=sa["wo"], sa_bo=sa["bo"],
                    ln1_g=ones((1, hidden)), ln1_b=zeros((1, hidden)),
                    ca_w=ca["w"], ca_b=ca["b"], ca_wo=ca["wo"], ca_bo=ca["bo"],
                    ln2_g=ones((1, hidden)), ln2_b=zeros((1, hidden)),
                    w1=w((hidden, ffn)), b1=w((1, ffn), 0.02),
                    w2=w((ffn, hidden)), b2=w((1, hidden), 0.02),
                    ln3_g=ones((1, hidden)), ln3_b=zeros((1, hidden)))

    return dict(
        in_proj=dict(w1t=w((in_dim, mid)), b1=w((1, mid), 0.02),
                     g1=ones((1, mid)), be1=zeros((1, mid)),
                     w2t=w((mid, hidden)), b2=w((1, hidden), 0.02),
                     g2=ones((1, hidden)), be2=zeros((1, hidden))),
        encoder=[enc_layer() for _ in range(n_enc)],
        encoder_norm=dict(g=ones((1, hidden)), b=zeros((1, hidden))),
        decoder=[dec_layer() for _ in range(n_dec)],
        decoder_norm=dict(g=ones((1, hidden)), b=zeros((1, hidden))),
        prototype=w((n_query, hidden), 1.0),
        regressor_w=w((n_query, hidden)),          # nn.Linear layout [out, in]
        regressor_b=w((1, n_query), 0.02),
        weight=jnp.linspace(0.0, score_range, n_query,
                            dtype=jnp.float32).reshape(1, n_query),
    )


if __name__ == "__main__":
    B, T, IN_DIM, HIDDEN, NQ = 2, 8, 64, 32, 4
    N_ENC, N_DEC = 1, 2

    key = jax.random.PRNGKey(0)
    kx, kp = jax.random.split(key)
    x = jax.random.normal(kx, (B, T, IN_DIM), jnp.float32)
    params = init_params(kp, IN_DIM, HIDDEN, 3 * HIDDEN, NQ, N_ENC, N_DEC)

    out, q1 = jax.jit(gdlt_forward)(params, x)
    jax.block_until_ready((out, q1))

    assert out.shape == (B,)
    assert q1.shape == (B, NQ, HIDDEN)
    assert bool(jnp.all(jnp.isfinite(out))) and bool(jnp.all(jnp.isfinite(q1)))
    print("KERNEL_OK")
</pallas_src>

<mosaic_0001>
module attributes {stable_mosaic.version = 11 : i64} {
  func.func @_in_proj_kernel(%arg0: memref<16x64xf32, #tpu.memory_space<vmem>>, %arg1: memref<64x32xf32, #tpu.memory_space<vmem>>, %arg2: memref<1x32xf32, #tpu.memory_space<vmem>>, %arg3: memref<1x32xf32, #tpu.memory_space<vmem>>, %arg4: memref<1x32xf32, #tpu.memory_space<vmem>>, %arg5: memref<32x32xf32, #tpu.memory_space<vmem>>, %arg6: memref<1x32xf32, #tpu.memory_space<vmem>>, %arg7: memref<1x32xf32, #tpu.memory_space<vmem>>, %arg8: memref<1x32xf32, #tpu.memory_space<vmem>>, %arg9: memref<16x32xf32, #tpu.memory_space<vmem>>) attributes {dimension_semantics = [], scalar_prefetch = 0 : i64, scratch_operands = 0 : i64, tpu.core_type = #tpu.core_type<tc>} {
    %c0 = arith.constant 0 : index
    %c0_0 = arith.constant 0 : index
    %0 = vector.load %arg0[%c0, %c0_0] : memref<16x64xf32, #tpu.memory_space<vmem>>, vector<16x64xf32>
    %c0_1 = arith.constant 0 : index
    %c0_2 = arith.constant 0 : index
    %1 = vector.load %arg1[%c0_1, %c0_2] : memref<64x32xf32, #tpu.memory_space<vmem>>, vector<64x32xf32>
    %cst = arith.constant dense<0.000000e+00> : vector<16x32xf32>
    %2 = tpu.matmul %0, %1, %cst {dimension_numbers = #tpu.dot_dimension_numbers<[1], [0], [0], [1], [0, 0, 1, 1], [], []>} : vector<16x64xf32>, vector<64x32xf32>, vector<16x32xf32> -> vector<16x32xf32>
    %c0_3 = arith.constant 0 : index
    %c0_4 = arith.constant 0 : index
    %3 = vector.load %arg2[%c0_3, %c0_4] : memref<1x32xf32, #tpu.memory_space<vmem>>, vector<1x32xf32>
    %4 = vector.broadcast %3 : vector<1x32xf32> to vector<16x32xf32>
    %5 = arith.addf %2, %4 : vector<16x32xf32>
    %cst_5 = arith.constant dense<0.000000e+00> : vector<32xf32>
    %6 = vector.multi_reduction <add>, %5, %cst_5 [0] : vector<16x32xf32> to vector<32xf32>
    %7 = vector.shape_cast %6 : vector<32xf32> to vector<1x32xf32>
    %cst_6 = arith.constant 6.250000e-02 : f32
    %8 = vector.broadcast %cst_6 : f32 to vector<1x32xf32>
    %9 = arith.mulf %7, %8 : vector<1x32xf32>
    %10 = arith.mulf %5, %5 : vector<16x32xf32>
    %cst_7 = arith.constant dense<0.000000e+00> : vector<32xf32>
    %11 = vector.multi_reduction <add>, %10, %cst_7 [0] : vector<16x32xf32> to vector<32xf32>
    %12 = vector.shape_cast %11 : vector<32xf32> to vector<1x32xf32>
    %cst_8 = arith.constant 6.250000e-02 : f32
    %13 = vector.broadcast %cst_8 : f32 to vector<1x32xf32>
    %14 = arith.mulf %12, %13 : vector<1x32xf32>
    %15 = arith.mulf %9, %9 : vector<1x32xf32>
    %16 = arith.subf %14, %15 : vector<1x32xf32>
    %17 = vector.broadcast %9 : vector<1x32xf32> to vector<16x32xf32>
    %18 = arith.subf %5, %17 : vector<16x32xf32>
    %cst_9 = arith.constant 9.99999974E-6 : f32
    %19 = vector.broadcast %cst_9 : f32 to vector<1x32xf32>
    %20 = arith.addf %16, %19 : vector<1x32xf32>
    %21 = math.rsqrt %20 : vector<1x32xf32>
    %22 = vector.broadcast %21 : vector<1x32xf32> to vector<16x32xf32>
    %23 = arith.mulf %18, %22 : vector<16x32xf32>
    %c0_10 = arith.constant 0 : index
    %c0_11 = arith.constant 0 : index
    %24 = vector.load %arg3[%c0_10, %c0_11] : memref<1x32xf32, #tpu.memory_space<vmem>>, vector<1x32xf32>
    %25 = vector.broadcast %24 : vector<1x32xf32> to vector<16x32xf32>
    %26 = arith.mulf %23, %25 : vector<16x32xf32>
    %c0_12 = arith.constant 0 : index
    %c0_13 = arith.constant 0 : index
    %27 = vector.load %arg4[%c0_12, %c0_13] : memref<1x32xf32, #tpu.memory_space<vmem>>, vector<1x32xf32>
    %28 = vector.broadcast %27 : vector<1x32xf32> to vector<16x32xf32>
    %29 = arith.addf %26, %28 : vector<16x32xf32>
    %cst_14 = arith.constant 0.000000e+00 : f32
    %30 = vector.broadcast %cst_14 : f32 to vector<16x32xf32>
    %31 = arith.maximumf %29, %30 : vector<16x32xf32>
    %c0_15 = arith.constant 0 : index
    %c0_16 = arith.constant 0 : index
    %32 = vector.load %arg5[%c0_15, %c0_16] : memref<32x32xf32, #tpu.memory_space<vmem>>, vector<32x32xf32>
    %cst_17 = arith.constant dense<0.000000e+00> : vector<16x32xf32>
    %33 = tpu.matmul %31, %32, %cst_17 {dimension_numbers = #tpu.dot_dimension_numbers<[1], [0], [0], [1], [0, 0, 1, 1], [], []>} : vector<16x32xf32>, vector<32x32xf32>, vector<16x32xf32> -> vector<16x32xf32>
    %c0_18 = arith.constant 0 : index
    %c0_19 = arith.constant 0 : index
    %34 = vector.load %arg6[%c0_18, %c0_19] : memref<1x32xf32, #tpu.memory_space<vmem>>, vector<1x32xf32>
    %35 = vector.broadcast %34 : vector<1x32xf32> to vector<16x32xf32>
    %36 = arith.addf %33, %35 : vector<16x32xf32>
    %cst_20 = arith.constant dense<0.000000e+00> : vector<32xf32>
    %37 = vector.multi_reduction <add>, %36, %cst_20 [0] : vector<16x32xf32> to vector<32xf32>
    %38 = vector.shape_cast %37 : vector<32xf32> to vector<1x32xf32>
    %cst_21 = arith.constant 6.250000e-02 : f32
    %39 = vector.broadcast %cst_21 : f32 to vector<1x32xf32>
    %40 = arith.mulf %38, %39 : vector<1x32xf32>
    %41 = arith.mulf %36, %36 : vector<16x32xf32>
    %cst_22 = arith.constant dense<0.000000e+00> : vector<32xf32>
    %42 = vector.multi_reduction <add>, %41, %cst_22 [0] : vector<16x32xf32> to vector<32xf32>
    %43 = vector.shape_cast %42 : vector<32xf32> to vector<1x32xf32>
    %cst_23 = arith.constant 6.250000e-02 : f32
    %44 = vector.broadcast %cst_23 : f32 to vector<1x32xf32>
    %45 = arith.mulf %43, %44 : vector<1x32xf32>
    %46 = arith.mulf %40, %40 : vector<1x32xf32>
    %47 = arith.subf %45, %46 : vector<1x32xf32>
    %48 = vector.broadcast %40 : vector<1x32xf32> to vector<16x32xf32>
    %49 = arith.subf %36, %48 : vector<16x32xf32>
    %cst_24 = arith.constant 9.99999974E-6 : f32
    %50 = vector.broadcast %cst_24 : f32 to vector<1x32xf32>
    %51 = arith.addf %47, %50 : vector<1x32xf32>
    %52 = math.rsqrt %51 : vector<1x32xf32>
    %53 = vector.broadcast %52 : vector<1x32xf32> to vector<16x32xf32>
    %54 = arith.mulf %49, %53 : vector<16x32xf32>
    %c0_25 = arith.constant 0 : index
    %c0_26 = arith.constant 0 : index
    %55 = vector.load %arg7[%c0_25, %c0_26] : memref<1x32xf32, #tpu.memory_space<vmem>>, vector<1x32xf32>
    %56 = vector.broadcast %55 : vector<1x32xf32> to vector<16x32xf32>
    %57 = arith.mulf %54, %56 : vector<16x32xf32>
    %c0_27 = arith.constant 0 : index
    %c0_28 = arith.constant 0 : index
    %58 = vector.load %arg8[%c0_27, %c0_28] : memref<1x32xf32, #tpu.memory_space<vmem>>, vector<1x32xf32>
    %59 = vector.broadcast %58 : vector<1x32xf32> to vector<16x32xf32>
    %60 = arith.addf %57, %59 : vector<16x32xf32>
    %c0_29 = arith.constant 0 : index
    %c0_30 = arith.constant 0 : index
    %61 = vector.load %arg9[%c0_29, %c0_30] : memref<16x32xf32, #tpu.memory_space<vmem>>, vector<16x32xf32>
    tpu.vector_store %arg9[%c0_29, %c0_30], %60 {strides = array<i32>} : memref<16x32xf32, #tpu.memory_space<vmem>>, vector<16x32xf32>,
    return
  }
}

module attributes {stable_mosaic.version = 11 : i64} {
  func.func @_encoder_layer_kernel(%arg0: i32, %arg1: memref<1x8x32xf32, #tpu.memory_space<vmem>>, %arg2: memref<3x32x32xf32, #tpu.memory_space<vmem>>, %arg3: memref<3x1x32xf32, #tpu.memory_space<vmem>>, %arg4: memref<32x32xf32, #tpu.memory_space<vmem>>, %arg5: memref<1x32xf32, #tpu.memory_space<vmem>>, %arg6: memref<1x32xf32, #tpu.memory_space<vmem>>, %arg7: memref<1x32xf32, #tpu.memory_space<vmem>>, %arg8: memref<32x96xf32, #tpu.memory_space<vmem>>, %arg9: memref<1x96xf32, #tpu.memory_space<vmem>>, %arg10: memref<96x32xf32, #tpu.memory_space<vmem>>, %arg11: memref<1x32xf32, #tpu.memory_space<vmem>>, %arg12: memref<1x32xf32, #tpu.memory_space<vmem>>, %arg13: memref<1x32xf32, #tpu.memory_space<vmem>>, %arg14: memref<1x8x32xf32, #tpu.memory_space<vmem>>) attributes {dimension_semantics = [#tpu.dimension_semantics<parallel>], iteration_bounds = array<i64: 2>, scalar_prefetch = 0 : i64, scratch_operands = 0 : i64, tpu.core_type = #tpu.core_type<tc>, window_params = [{transform_indices = @transform_0, window_bounds = array<i64: 1, 8, 32>}, {pipeline_mode = #tpu.pipeline_mode<synchronous>, transform_indices = @transform_1, window_bounds = array<i64: 3, 32, 32>}, {pipeline_mode = #tpu.pipeline_mode<synchronous>, transform_indices = @transform_2, window_bounds = array<i64: 3, 1, 32>}, {pipeline_mode = #tpu.pipeline_mode<synchronous>, transform_indices = @transform_3, window_bounds = array<i64: 32, 32>}, {pipeline_mode = #tpu.pipeline_mode<synchronous>, transform_indices = @transform_4, window_bounds = array<i64: 1, 32>}, {pipeline_mode = #tpu.pipeline_mode<synchronous>, transform_indices = @transform_5, window_bounds = array<i64: 1, 32>}, {pipeline_mode = #tpu.pipeline_mode<synchronous>, transform_indices = @transform_6, window_bounds = array<i64: 1, 32>}, {pipeline_mode = #tpu.pipeline_mode<synchronous>, transform_indices = @transform_7, window_bounds = array<i64: 32, 96>}, {pipeline_mode = #tpu.pipeline_mode<synchronous>, transform_indices = @transform_8, window_bounds = array<i64: 1, 96>}, {pipeline_mode = #tpu.pipeline_mode<synchronous>, transform_indices = @transform_9, window_bounds = array<i64: 96, 32>}, {pipeline_mode = #tpu.pipeline_mode<synchronous>, transform_indices = @transform_10, window_bounds = array<i64: 1, 32>}, {pipeline_mode = #tpu.pipeline_mode<synchronous>, transform_indices = @transform_11, window_bounds = array<i64: 1, 32>}, {pipeline_mode = #tpu.pipeline_mode<synchronous>, transform_indices = @transform_12, window_bounds = array<i64: 1, 32>}, {transform_indices = @transform_13, window_bounds = array<i64: 1, 8, 32>}]} {
    %c0 = arith.constant 0 : index
    %c0_0 = arith.constant 0 : index
    %c0_1 = arith.constant 0 : index
    %0 = vector.load %arg1[%c0, %c0_0, %c0_1] : memref<1x8x32xf32, #tpu.memory_space<vmem>>, vector<1x8x32xf32>
    %1 = vector.shape_cast %0 : vector<1x8x32xf32> to vector<8x32xf32>
    %c0_2 = arith.constant 0 : index
    %c0_3 = arith.constant 0 : index
    %2 = vector.load %arg4[%c0_2, %c0_3] : memref<32x32xf32, #tpu.memory_space<vmem>>, vector<32x32xf32>
    %c0_4 = arith.constant 0 : index
    %c0_5 = arith.constant 0 : index
    %3 = vector.load %arg5[%c0_4, %c0_5] : memref<1x32xf32, #tpu.memory_space<vmem>>, vector<1x32xf32>
    %c0_6 = arith.constant 0 : index
    %c0_7 = arith.constant 0 : index
    %c0_8 = arith.constant 0 : index
    %4 = vector.load %arg2[%c0_6, %c0_7, %c0_8] : memref<3x32x32xf32, #tpu.memory_space<vmem>>, vector<1x32x32xf32>
    %5 = vector.shape_cast %4 : vector<1x32x32xf32> to vector<32x32xf32>
    %cst = arith.constant dense<0.000000e+00> : vector<8x32xf32>
    %6 = tpu.matmul %1, %5, %cst {dimension_numbers = #tpu.dot_dimension_numbers<[1], [0], [0], [1], [0, 0, 1, 1], [], []>} : vector<8x32xf32>, vector<32x32xf32>, vector<8x32xf32> -> vector<8x32xf32>
    %c0_9 = arith.constant 0 : index
    %c0_10 = arith.constant 0 : index
    %c0_11 = arith.constant 0 : index
    %7 = vector.load %arg3[%c0_9, %c0_10, %c0_11] : memref<3x1x32xf32, #tpu.memory_space<vmem>>, vector<1x1x32xf32>
    %8 = vector.shape_cast %7 : vector<1x1x32xf32> to vector<1x32xf32>
    %9 = vector.broadcast %8 : vector<1x32xf32> to vector<8x32xf32>
    %10 = arith.addf %6, %9 : vector<8x32xf32>
    %c1 = arith.constant 1 : index
    %c0_12 = arith.constant 0 : index
    %c0_13 = arith.constant 0 : index
    %11 = vector.load %arg2[%c1, %c0_12, %c0_13] : memref<3x32x32xf32, #tpu.memory_space<vmem>>, vector<1x32x32xf32>
    %12 = vector.shape_cast %11 : vector<1x32x32xf32> to vector<32x32xf32>
    %cst_14 = arith.constant dense<0.000000e+00> : vector<8x32xf32>
    %13 = tpu.matmul %1, %12, %cst_14 {dimension_numbers = #tpu.dot_dimension_numbers<[1], [0], [0], [1], [0, 0, 1, 1], [], []>} : vector<8x32xf32>, vector<32x32xf32>, vector<8x32xf32> -> vector<8x32xf32>
    %c1_15 = arith.constant 1 : index
    %c0_16 = arith.constant 0 : index
    %c0_17 = arith.constant 0 : index
    %14 = vector.load %arg3[%c1_15, %c0_16, %c0_17] : memref<3x1x32xf32, #tpu.memory_space<vmem>>, vector<1x1x32xf32>
    %15 = vector.shape_cast %14 : vector<1x1x32xf32> to vector<1x32xf32>
    %16 = vector.broadcast %15 : vector<1x32xf32> to vector<8x32xf32>
    %17 = arith.addf %13, %16 : vector<8x32xf32>
    %c2 = arith.constant 2 : index
    %c0_18 = arith.constant 0 : index
    %c0_19 = arith.constant 0 : index
    %18 = vector.load %arg2[%c2, %c0_18, %c0_19] : memref<3x32x32xf32, #tpu.memory_space<vmem>>, vector<1x32x32xf32>
    %19 = vector.shape_cast %18 : vector<1x32x32xf32> to vector<32x32xf32>
    %cst_20 = arith.constant dense<0.000000e+00> : vector<8x32xf32>
    %20 = tpu.matmul %1, %19, %cst_20 {dimension_numbers = #tpu.dot_dimension_numbers<[1], [0], [0], [1], [0, 0, 1, 1], [], []>} : vector<8x32xf32>, vector<32x32xf32>, vector<8x32xf32> -> vector<8x32xf32>
    %c2_21 = arith.constant 2 : index
    %c0_22 = arith.constant 0 : index
    %c0_23 = arith.constant 0 : index
    %21 = vector.load %arg3[%c2_21, %c0_22, %c0_23] : memref<3x1x32xf32, #tpu.memory_space<vmem>>, vector<1x1x32xf32>
    %22 = vector.shape_cast %21 : vector<1x1x32xf32> to vector<1x32xf32>
    %23 = vector.broadcast %22 : vector<1x32xf32> to vector<8x32xf32>
    %24 = arith.addf %20, %23 : vector<8x32xf32>
    %cst_24 = arith.constant dense<0.000000e+00> : vector<8x8xf32>
    %25 = tpu.matmul %10, %17, %cst_24 {dimension_numbers = #tpu.dot_dimension_numbers<[1], [1], [0], [0], [0, 0, 1, 0], [], []>} : vector<8x32xf32>, vector<8x32xf32>, vector<8x8xf32> -> vector<8x8xf32>
    %cst_25 = arith.constant 0.176776692 : f32
    %26 = vector.broadcast %cst_25 : f32 to vector<8x8xf32>
    %27 = arith.mulf %25, %26 : vector<8x8xf32>
    %cst_26 = arith.constant dense<0xFF800000> : vector<8xf32>
    %28 = vector.multi_reduction <maximumf>, %27, %cst_26 [1] : vector<8x8xf32> to vector<8xf32>
    %29 = vector.shape_cast %28 : vector<8xf32> to vector<8x1xf32>
    %30 = vector.broadcast %29 : vector<8x1xf32> to vector<8x8xf32>
    %31 = arith.subf %27, %30 : vector<8x8xf32>
    %32 = math.exp %31 : vector<8x8xf32>
    %cst_27 = arith.constant dense<0.000000e+00> : vector<8xf32>
    %33 = vector.multi_reduction <add>, %32, %cst_27 [1] : vector<8x8xf32> to vector<8xf32>
    %34 = vector.shape_cast %33 : vector<8xf32> to vector<8x1xf32>
    %35 = tpu.reciprocal %34 {approx = true} : vector<8x1xf32> -> vector<8x1xf32>
    %36 = vector.broadcast %35 : vector<8x1xf32> to vector<8x8xf32>
    %37 = arith.mulf %32, %36 : vector<8x8xf32>
    %cst_28 = arith.constant dense<0.000000e+00> : vector<8x32xf32>
    %38 = tpu.matmul %37, %24, %cst_28 {dimension_numbers = #tpu.dot_dimension_numbers<[1], [0], [0], [1], [0, 0, 1, 1], [], []>} : vector<8x8xf32>, vector<8x32xf32>, vector<8x32xf32> -> vector<8x32xf32>
    %cst_29 = arith.constant dense<0.000000e+00> : vector<8x32xf32>
    %39 = tpu.matmul %38, %2, %cst_29 {dimension_numbers = #tpu.dot_dimension_numbers<[1], [0], [0], [1], [0, 0, 1, 1], [], []>} : vector<8x32xf32>, vector<32x32xf32>, vector<8x32xf32> -> vector<8x32xf32>
    %40 = vector.broadcast %3 : vector<1x32xf32> to vector<8x32xf32>
    %41 = arith.addf %39, %40 : vector<8x32xf32>
    %42 = arith.addf %1, %41 : vector<8x32xf32>
    %c0_30 = arith.constant 0 : index
    %c0_31 = arith.constant 0 : index
    %43 = vector.load %arg6[%c0_30, %c0_31] : memref<1x32xf32, #tpu.memory_space<vmem>>, vector<1x32xf32>
    %c0_32 = arith.constant 0 : index
    %c0_33 = arith.constant 0 : index
    %44 = vector.load %arg7[%c0_32, %c0_33] : memref<1x32xf32, #tpu.memory_space<vmem>>, vector<1x32xf32>
    %cst_34 = arith.constant dense<0.000000e+00> : vector<8xf32>
    %45 = vector.multi_reduction <add>, %42, %cst_34 [1] : vector<8x32xf32> to vector<8xf32>
    %46 = vector.shape_cast %45 : vector<8xf32> to vector<8x1xf32>
    %cst_35 = arith.constant 3.200000e+01 : f32
    %47 = vector.broadcast %cst_35 : f32 to vector<8x1xf32>
    %48 = arith.divf %46, %47 : vector<8x1xf32>
    %49 = vector.broadcast %48 : vector<8x1xf32> to vector<8x32xf32>
    %50 = arith.subf %42, %49 : vector<8x32xf32>
    %51 = arith.mulf %50, %50 : vector<8x32xf32>
    %cst_36 = arith.constant dense<0.000000e+00> : vector<8xf32>
    %52 = vector.multi_reduction <add>, %51, %cst_36 [1] : vector<8x32xf32> to vector<8xf32>
    %53 = vector.shape_cast %52 : vector<8xf32> to vector<8x1xf32>
    %cst_37 = arith.constant 3.200000e+01 : f32
    %54 = vector.broadcast %cst_37 : f32 to vector<8x1xf32>
    %55 = arith.divf %53, %54 : vector<8x1xf32>
    %56 = vector.broadcast %48 : vector<8x1xf32> to vector<8x32xf32>
    %57 = arith.subf %42, %56 : vector<8x32xf32>
    %cst_38 = arith.constant 9.99999974E-6 : f32
    %58 = vector.broadcast %cst_38 : f32 to vector<8x1xf32>
    %59 = arith.addf %55, %58 : vector<8x1xf32>
    %60 = math.rsqrt %59 : vector<8x1xf32>
    %61 = vector.broadcast %60 : vector<8x1xf32> to vector<8x32xf32>
    %62 = arith.mulf %57, %61 : vector<8x32xf32>
    %63 = vector.broadcast %43 : vector<1x32xf32> to vector<8x32xf32>
    %64 = arith.mulf %62, %63 : vector<8x32xf32>
    %65 = vector.broadcast %44 : vector<1x32xf32> to vector<8x32xf32>
    %66 = arith.addf %64, %65 : vector<8x32xf32>
    %c0_39 = arith.constant 0 : index
    %c0_40 = arith.constant 0 : index
    %67 = vector.load %arg8[%c0_39, %c0_40] : memref<32x96xf32, #tpu.memory_space<vmem>>, vector<32x96xf32>
    %cst_41 = arith.constant dense<0.000000e+00> : vector<8x96xf32>
    %68 = tpu.matmul %66, %67, %cst_41 {dimension_numbers = #tpu.dot_dimension_numbers<[1], [0], [0], [1], [0, 0, 1, 1], [], []>} : vector<8x32xf32>, vector<32x96xf32>, vector<8x96xf32> -> vector<8x96xf32>
    %c0_42 = arith.constant 0 : index
    %c0_43 = arith.constant 0 : index
    %69 = vector.load %arg9[%c0_42, %c0_43] : memref<1x96xf32, #tpu.memory_space<vmem>>, vector<1x96xf32>
    %70 = vector.broadcast %69 : vector<1x96xf32> to vector<8x96xf32>
    %71 = arith.addf %68, %70 : vector<8x96xf32>
    %cst_44 = arith.constant 0.000000e+00 : f32
    %72 = vector.broadcast %cst_44 : f32 to vector<8x96xf32>
    %73 = arith.maximumf %71, %72 : vector<8x96xf32>
    %c0_45 = arith.constant 0 : index
    %c0_46 = arith.constant 0 : index
    %74 = vector.load %arg10[%c0_45, %c0_46] : memref<96x32xf32, #tpu.memory_space<vmem>>, vector<96x32xf32>
    %cst_47 = arith.constant dense<0.000000e+00> : vector<8x32xf32>
    %75 = tpu.matmul %73, %74, %cst_47 {dimension_numbers = #tpu.dot_dimension_numbers<[1], [0], [0], [1], [0, 0, 1, 1], [], []>} : vector<8x96xf32>, vector<96x32xf32>, vector<8x32xf32> -> vector<8x32xf32>
    %c0_48 = arith.constant 0 : index
    %c0_49 = arith.constant 0 : index
    %76 = vector.load %arg11[%c0_48, %c0_49] : memref<1x32xf32, #tpu.memory_space<vmem>>, vector<1x32xf32>
    %77 = vector.broadcast %76 : vector<1x32xf32> to vector<8x32xf32>
    %78 = arith.addf %75, %77 : vector<8x32xf32>
    %79 = arith.addf %66, %78 : vector<8x32xf32>
    %c0_50 = arith.constant 0 : index
    %c0_51 = arith.constant 0 : index
    %80 = vector.load %arg12[%c0_50, %c0_51] : memref<1x32xf32, #tpu.memory_space<vmem>>, vector<1x32xf32>
    %c0_52 = arith.constant 0 : index
    %c0_53 = arith.constant 0 : index
    %81 = vector.load %arg13[%c0_52, %c0_53] : memref<1x32xf32, #tpu.memory_space<vmem>>, vector<1x32xf32>
    %cst_54 = arith.constant dense<0.000000e+00> : vector<8xf32>
    %82 = vector.multi_reduction <add>, %79, %cst_54 [1] : vector<8x32xf32> to vector<8xf32>
    %83 = vector.shape_cast %82 : vector<8xf32> to vector<8x1xf32>
    %cst_55 = arith.constant 3.200000e+01 : f32
    %84 = vector.broadcast %cst_55 : f32 to vector<8x1xf32>
    %85 = arith.divf %83, %84 : vector<8x1xf32>
    %86 = vector.broadcast %85 : vector<8x1xf32> to vector<8x32xf32>
    %87 = arith.subf %79, %86 : vector<8x32xf32>
    %88 = arith.mulf %87, %87 : vector<8x32xf32>
    %cst_56 = arith.constant dense<0.000000e+00> : vector<8xf32>
    %89 = vector.multi_reduction <add>, %88, %cst_56 [1] : vector<8x32xf32> to vector<8xf32>
    %90 = vector.shape_cast %89 : vector<8xf32> to vector<8x1xf32>
    %cst_57 = arith.constant 3.200000e+01 : f32
    %91 = vector.broadcast %cst_57 : f32 to vector<8x1xf32>
    %92 = arith.divf %90, %91 : vector<8x1xf32>
    %93 = vector.broadcast %85 : vector<8x1xf32> to vector<8x32xf32>
    %94 = arith.subf %79, %93 : vector<8x32xf32>
    %cst_58 = arith.constant 9.99999974E-6 : f32
    %95 = vector.broadcast %cst_58 : f32 to vector<8x1xf32>
    %96 = arith.addf %92, %95 : vector<8x1xf32>
    %97 = math.rsqrt %96 : vector<8x1xf32>
    %98 = vector.broadcast %97 : vector<8x1xf32> to vector<8x32xf32>
    %99 = arith.mulf %94, %98 : vector<8x32xf32>
    %100 = vector.broadcast %80 : vector<1x32xf32> to vector<8x32xf32>
    %101 = arith.mulf %99, %100 : vector<8x32xf32>
    %102 = vector.broadcast %81 : vector<1x32xf32> to vector<8x32xf32>
    %103 = arith.addf %101, %102 : vector<8x32xf32>
    %c0_59 = arith.constant 0 : index
    %c0_60 = arith.constant 0 : index
    %c0_61 = arith.constant 0 : index
    %104 = vector.load %arg14[%c0_59, %c0_60, %c0_61] : memref<1x8x32xf32, #tpu.memory_space<vmem>>, vector<1x8x32xf32>
    %105 = vector.shape_cast %104 : vector<1x8x32xf32> to vector<8x32xf32>
    %106 = vector.shape_cast %103 : vector<8x32xf32> to vector<1x8x32xf32>
    tpu.vector_store %arg14[%c0_59, %c0_60, %c0_61], %106 {strides = array<i32>} : memref<1x8x32xf32, #tpu.memory_space<vmem>>, vector<1x8x32xf32>,
    return
  }
  func.func @transform_0(%arg0: i32) -> (i32, i32, i32) {
    %c0_i32 = arith.constant 0 : i32
    %c0_i32_0 = arith.constant 0 : i32
    %c0_i32_1 = arith.constant 0 : i32
    return %arg0, %c0_i32, %c0_i32_0 : i32, i32, i32
  }
  func.func @transform_1(%arg0: i32) -> (i32, i32, i32) {
    %c0_i32 = arith.constant 0 : i32
    %c0_i32_0 = arith.constant 0 : i32
    %c0_i32_1 = arith.constant 0 : i32
    %c0_i32_2 = arith.constant 0 : i32
    return %c0_i32, %c0_i32_0, %c0_i32_1 : i32, i32, i32
  }
  func.func @transform_2(%arg0: i32) -> (i32, i32, i32) {
    %c0_i32 = arith.constant 0 : i32
    %c0_i32_0 = arith.constant 0 : i32
    %c0_i32_1 = arith.constant 0 : i32
    %c0_i32_2 = arith.constant 0 : i32
    return %c0_i32, %c0_i32_0, %c0_i32_1 : i32, i32, i32
  }
  func.func @transform_3(%arg0: i32) -> (i32, i32) {
    %c0_i32 = arith.constant 0 : i32
    %c0_i32_0 = arith.constant 0 : i32
    %c0_i32_1 = arith.constant 0 : i32
    return %c0_i32, %c0_i32_0 : i32, i32
  }
  func.func @transform_4(%arg0: i32) -> (i32, i32) {
    %c0_i32 = arith.constant 0 : i32
    %c0_i32_0 = arith.constant 0 : i32
    %c0_i32_1 = arith.constant 0 : i32
    return %c0_i32, %c0_i32_0 : i32, i32
  }
  func.func @transform_5(%arg0: i32) -> (i32, i32) {
    %c0_i32 = arith.constant 0 : i32
    %c0_i32_0 = arith.constant 0 : i32
    %c0_i32_1 = arith.constant 0 : i32
    return %c0_i32, %c0_i32_0 : i32, i32
  }
  func.func @transform_6(%arg0: i32) -> (i32, i32) {
    %c0_i32 = arith.constant 0 : i32
    %c0_i32_0 = arith.constant 0 : i32
    %c0_i32_1 = arith.constant 0 : i32
    return %c0_i32, %c0_i32_0 : i32, i32
  }
  func.func @transform_7(%arg0: i32) -> (i32, i32) {
    %c0_i32 = arith.constant 0 : i32
    %c0_i32_0 = arith.constant 0 : i32
    %c0_i32_1 = arith.constant 0 : i32
    return %c0_i32, %c0_i32_0 : i32, i32
  }
  func.func @transform_8(%arg0: i32) -> (i32, i32) {
    %c0_i32 = arith.constant 0 : i32
    %c0_i32_0 = arith.constant 0 : i32
    %c0_i32_1 = arith.constant 0 : i32
    return %c0_i32, %c0_i32_0 : i32, i32
  }
  func.func @transform_9(%arg0: i32) -> (i32, i32) {
    %c0_i32 = arith.constant 0 : i32
    %c0_i32_0 = arith.constant 0 : i32
    %c0_i32_1 = arith.constant 0 : i32
    return %c0_i32, %c0_i32_0 : i32, i32
  }
  func.func @transform_10(%arg0: i32) -> (i32, i32) {
    %c0_i32 = arith.constant 0 : i32
    %c0_i32_0 = arith.constant 0 : i32
    %c0_i32_1 = arith.constant 0 : i32
    return %c0_i32, %c0_i32_0 : i32, i32
  }
  func.func @transform_11(%arg0: i32) -> (i32, i32) {
    %c0_i32 = arith.constant 0 : i32
    %c0_i32_0 = arith.constant 0 : i32
    %c0_i32_1 = arith.constant 0 : i32
    return %c0_i32, %c0_i32_0 : i32, i32
  }
  func.func @transform_12(%arg0: i32) -> (i32, i32) {
    %c0_i32 = arith.constant 0 : i32
    %c0_i32_0 = arith.constant 0 : i32
    %c0_i32_1 = arith.constant 0 : i32
    return %c0_i32, %c0_i32_0 : i32, i32
  }
  func.func @transform_13(%arg0: i32) -> (i32, i32, i32) {
    %c0_i32 = arith.constant 0 : i32
    %c0_i32_0 = arith.constant 0 : i32
    %c0_i32_1 = arith.constant 0 : i32
    return %arg0, %c0_i32, %c0_i32_0 : i32, i32, i32
  }
}

module attributes {stable_mosaic.version = 11 : i64} {
  func.func @_layernorm_kernel(%arg0: memref<16x32xf32, #tpu.memory_space<vmem>>, %arg1: memref<1x32xf32, #tpu.memory_space<vmem>>, %arg2: memref<1x32xf32, #tpu.memory_space<vmem>>, %arg3: memref<16x32xf32, #tpu.memory_space<vmem>>) attributes {dimension_semantics = [], scalar_prefetch = 0 : i64, scratch_operands = 0 : i64, tpu.core_type = #tpu.core_type<tc>} {
    %c0 = arith.constant 0 : index
    %c0_0 = arith.constant 0 : index
    %0 = vector.load %arg0[%c0, %c0_0] : memref<16x32xf32, #tpu.memory_space<vmem>>, vector<16x32xf32>
    %c0_1 = arith.constant 0 : index
    %c0_2 = arith.constant 0 : index
    %1 = vector.load %arg1[%c0_1, %c0_2] : memref<1x32xf32, #tpu.memory_space<vmem>>, vector<1x32xf32>
    %c0_3 = arith.constant 0 : index
    %c0_4 = arith.constant 0 : index
    %2 = vector.load %arg2[%c0_3, %c0_4] : memref<1x32xf32, #tpu.memory_space<vmem>>, vector<1x32xf32>
    %cst = arith.constant dense<0.000000e+00> : vector<16xf32>
    %3 = vector.multi_reduction <add>, %0, %cst [1] : vector<16x32xf32> to vector<16xf32>
    %4 = vector.shape_cast %3 : vector<16xf32> to vector<16x1xf32>
    %cst_5 = arith.constant 3.200000e+01 : f32
    %5 = vector.broadcast %cst_5 : f32 to vector<16x1xf32>
    %6 = arith.divf %4, %5 : vector<16x1xf32>
    %7 = vector.broadcast %6 : vector<16x1xf32> to vector<16x32xf32>
    %8 = arith.subf %0, %7 : vector<16x32xf32>
    %9 = arith.mulf %8, %8 : vector<16x32xf32>
    %cst_6 = arith.constant dense<0.000000e+00> : vector<16xf32>
    %10 = vector.multi_reduction <add>, %9, %cst_6 [1] : vector<16x32xf32> to vector<16xf32>
    %11 = vector.shape_cast %10 : vector<16xf32> to vector<16x1xf32>
    %cst_7 = arith.constant 3.200000e+01 : f32
    %12 = vector.broadcast %cst_7 : f32 to vector<16x1xf32>
    %13 = arith.divf %11, %12 : vector<16x1xf32>
    %14 = vector.broadcast %6 : vector<16x1xf32> to vector<16x32xf32>
    %15 = arith.subf %0, %14 : vector<16x32xf32>
    %cst_8 = arith.constant 9.99999974E-6 : f32
    %16 = vector.broadcast %cst_8 : f32 to vector<16x1xf32>
    %17 = arith.addf %13, %16 : vector<16x1xf32>
    %18 = math.rsqrt %17 : vector<16x1xf32>
    %19 = vector.broadcast %18 : vector<16x1xf32> to vector<16x32xf32>
    %20 = arith.mulf %15, %19 : vector<16x32xf32>
    %21 = vector.broadcast %1 : vector<1x32xf32> to vector<16x32xf32>
    %22 = arith.mulf %20, %21 : vector<16x32xf32>
    %23 = vector.broadcast %2 : vector<1x32xf32> to vector<16x32xf32>
    %24 = arith.addf %22, %23 : vector<16x32xf32>
    %c0_9 = arith.constant 0 : index
    %c0_10 = arith.constant 0 : index
    %25 = vector.load %arg3[%c0_9, %c0_10] : memref<16x32xf32, #tpu.memory_space<vmem>>, vector<16x32xf32>
    tpu.vector_store %arg3[%c0_9, %c0_10], %24 {strides = array<i32>} : memref<16x32xf32, #tpu.memory_space<vmem>>, vector<16x32xf32>,
    return
  }
}

module attributes {stable_mosaic.version = 11 : i64} {
  func.func @_decoder_layer_kernel(%arg0: i32, %arg1: memref<1x4x32xf32, #tpu.memory_space<vmem>>, %arg2: memref<1x8x32xf32, #tpu.memory_space<vmem>>, %arg3: memref<3x32x32xf32, #tpu.memory_space<vmem>>, %arg4: memref<3x1x32xf32, #tpu.memory_space<vmem>>, %arg5: memref<32x32xf32, #tpu.memory_space<vmem>>, %arg6: memref<1x32xf32, #tpu.memory_space<vmem>>, %arg7: memref<1x32xf32, #tpu.memory_space<vmem>>, %arg8: memref<1x32xf32, #tpu.memory_space<vmem>>, %arg9: memref<3x32x32xf32, #tpu.memory_space<vmem>>, %arg10: memref<3x1x32xf32, #tpu.memory_space<vmem>>, %arg11: memref<32x32xf32, #tpu.memory_space<vmem>>, %arg12: memref<1x32xf32, #tpu.memory_space<vmem>>, %arg13: memref<1x32xf32, #tpu.memory_space<vmem>>, %arg14: memref<1x32xf32, #tpu.memory_space<vmem>>, %arg15: memref<32x96xf32, #tpu.memory_space<vmem>>, %arg16: memref<1x96xf32, #tpu.memory_space<vmem>>, %arg17: memref<96x32xf32, #tpu.memory_space<vmem>>, %arg18: memref<1x32xf32, #tpu.memory_space<vmem>>, %arg19: memref<1x32xf32, #tpu.memory_space<vmem>>, %arg20: memref<1x32xf32, #tpu.memory_space<vmem>>, %arg21: memref<1x4x32xf32, #tpu.memory_space<vmem>>) attributes {dimension_semantics = [#tpu.dimension_semantics<parallel>], iteration_bounds = array<i64: 2>, scalar_prefetch = 0 : i64, scratch_operands = 0 : i64, tpu.core_type = #tpu.core_type<tc>, window_params = [{transform_indices = @transform_0, window_bounds = array<i64: 1, 4, 32>}, {transform_indices = @transform_1, window_bounds = array<i64: 1, 8, 32>}, {pipeline_mode = #tpu.pipeline_mode<synchronous>, transform_indices = @transform_2, window_bounds = array<i64: 3, 32, 32>}, {pipeline_mode = #tpu.pipeline_mode<synchronous>, transform_indices = @transform_3, window_bounds = array<i64: 3, 1, 32>}, {pipeline_mode = #tpu.pipeline_mode<synchronous>, transform_indices = @transform_4, window_bounds = array<i64: 32, 32>}, {pipeline_mode = #tpu.pipeline_mode<synchronous>, transform_indices = @transform_5, window_bounds = array<i64: 1, 32>}, {pipeline_mode = #tpu.pipeline_mode<synchronous>, transform_indices = @transform_6, window_bounds = array<i64: 1, 32>}, {pipeline_mode = #tpu.pipeline_mode<synchronous>, transform_indices = @transform_7, window_bounds = array<i64: 1, 32>}, {pipeline_mode = #tpu.pipeline_mode<synchronous>, transform_indices = @transform_8, window_bounds = array<i64: 3, 32, 32>}, {pipeline_mode = #tpu.pipeline_mode<synchronous>, transform_indices = @transform_9, window_bounds = array<i64: 3, 1, 32>}, {pipeline_mode = #tpu.pipeline_mode<synchronous>, transform_indices = @transform_10, window_bounds = array<i64: 32, 32>}, {pipeline_mode = #tpu.pipeline_mode<synchronous>, transform_indices = @transform_11, window_bounds = array<i64: 1, 32>}, {pipeline_mode = #tpu.pipeline_mode<synchronous>, transform_indices = @transform_12, window_bounds = array<i64: 1, 32>}, {pipeline_mode = #tpu.pipeline_mode<synchronous>, transform_indices = @transform_13, window_bounds = array<i64: 1, 32>}, {pipeline_mode = #tpu.pipeline_mode<synchronous>, transform_indices = @transform_14, window_bounds = array<i64: 32, 96>}, {pipeline_mode = #tpu.pipeline_mode<synchronous>, transform_indices = @transform_15, window_bounds = array<i64: 1, 96>}, {pipeline_mode = #tpu.pipeline_mode<synchronous>, transform_indices = @transform_16, window_bounds = array<i64: 96, 32>}, {pipeline_mode = #tpu.pipeline_mode<synchronous>, transform_indices = @transform_17, window_bounds = array<i64: 1, 32>}, {pipeline_mode = #tpu.pipeline_mode<synchronous>, transform_indices = @transform_18, window_bounds = array<i64: 1, 32>}, {pipeline_mode = #tpu.pipeline_mode<synchronous>, transform_indices = @transform_19, window_bounds = array<i64: 1, 32>}, {transform_indices = @transform_20, window_bounds = array<i64: 1, 4, 32>}]} {
    %c0 = arith.constant 0 : index
    %c0_0 = arith.constant 0 : index
    %c0_1 = arith.constant 0 : index
    %0 = vector.load %arg1[%c0, %c0_0, %c0_1] : memref<1x4x32xf32, #tpu.memory_space<vmem>>, vector<1x4x32xf32>
    %1 = vector.shape_cast %0 : vector<1x4x32xf32> to vector<4x32xf32>
    %c0_2 = arith.constant 0 : index
    %c0_3 = arith.constant 0 : index
    %c0_4 = arith.constant 0 : index
    %2 = vector.load %arg2[%c0_2, %c0_3, %c0_4] : memref<1x8x32xf32, #tpu.memory_space<vmem>>, vector<1x8x32xf32>
    %3 = vector.shape_cast %2 : vector<1x8x32xf32> to vector<8x32xf32>
    %c0_5 = arith.constant 0 : index
    %c0_6 = arith.constant 0 : index
    %4 = vector.load %arg5[%c0_5, %c0_6] : memref<32x32xf32, #tpu.memory_space<vmem>>, vector<32x32xf32>
    %c0_7 = arith.constant 0 : index
    %c0_8 = arith.constant 0 : index
    %5 = vector.load %arg6[%c0_7, %c0_8] : memref<1x32xf32, #tpu.memory_space<vmem>>, vector<1x32xf32>
    %c0_9 = arith.constant 0 : index
    %c0_10 = arith.constant 0 : index
    %c0_11 = arith.constant 0 : index
    %6 = vector.load %arg3[%c0_9, %c0_10, %c0_11] : memref<3x32x32xf32, #tpu.memory_space<vmem>>, vector<1x32x32xf32>
    %7 = vector.shape_cast %6 : vector<1x32x32xf32> to vector<32x32xf32>
    %cst = arith.constant dense<0.000000e+00> : vector<4x32xf32>
    %8 = tpu.matmul %1, %7, %cst {dimension_numbers = #tpu.dot_dimension_numbers<[1], [0], [0], [1], [0, 0, 1, 1], [], []>} : vector<4x32xf32>, vector<32x32xf32>, vector<4x32xf32> -> vector<4x32xf32>
    %c0_12 = arith.constant 0 : index
    %c0_13 = arith.constant 0 : index
    %c0_14 = arith.constant 0 : index
    %9 = vector.load %arg4[%c0_12, %c0_13, %c0_14] : memref<3x1x32xf32, #tpu.memory_space<vmem>>, vector<1x1x32xf32>
    %10 = vector.shape_cast %9 : vector<1x1x32xf32> to vector<1x32xf32>
    %11 = vector.broadcast %10 : vector<1x32xf32> to vector<4x32xf32>
    %12 = arith.addf %8, %11 : vector<4x32xf32>
    %c1 = arith.constant 1 : index
    %c0_15 = arith.constant 0 : index
    %c0_16 = arith.constant 0 : index
    %13 = vector.load %arg3[%c1, %c0_15, %c0_16] : memref<3x32x32xf32, #tpu.memory_space<vmem>>, vector<1x32x32xf32>
    %14 = vector.shape_cast %13 : vector<1x32x32xf32> to vector<32x32xf32>
    %cst_17 = arith.constant dense<0.000000e+00> : vector<4x32xf32>
    %15 = tpu.matmul %1, %14, %cst_17 {dimension_numbers = #tpu.dot_dimension_numbers<[1], [0], [0], [1], [0, 0, 1, 1], [], []>} : vector<4x32xf32>, vector<32x32xf32>, vector<4x32xf32> -> vector<4x32xf32>
    %c1_18 = arith.constant 1 : index
    %c0_19 = arith.constant 0 : index
    %c0_20 = arith.constant 0 : index
    %16 = vector.load %arg4[%c1_18, %c0_19, %c0_20] : memref<3x1x32xf32, #tpu.memory_space<vmem>>, vector<1x1x32xf32>
    %17 = vector.shape_cast %16 : vector<1x1x32xf32> to vector<1x32xf32>
    %18 = vector.broadcast %17 : vector<1x32xf32> to vector<4x32xf32>
    %19 = arith.addf %15, %18 : vector<4x32xf32>
    %c2 = arith.constant 2 : index
    %c0_21 = arith.constant 0 : index
    %c0_22 = arith.constant 0 : index
    %20 = vector.load %arg3[%c2, %c0_21, %c0_22] : memref<3x32x32xf32, #tpu.memory_space<vmem>>, vector<1x32x32xf32>
    %21 = vector.shape_cast %20 : vector<1x32x32xf32> to vector<32x32xf32>
    %cst_23 = arith.constant dense<0.000000e+00> : vector<4x32xf32>
    %22 = tpu.matmul %1, %21, %cst_23 {dimension_numbers = #tpu.dot_dimension_numbers<[1], [0], [0], [1], [0, 0, 1, 1], [], []>} : vector<4x32xf32>, vector<32x32xf32>, vector<4x32xf32> -> vector<4x32xf32>
    %c2_24 = arith.constant 2 : index
    %c0_25 = arith.constant 0 : index
    %c0_26 = arith.constant 0 : index
    %23 = vector.load %arg4[%c2_24, %c0_25, %c0_26] : memref<3x1x32xf32, #tpu.memory_space<vmem>>, vector<1x1x32xf32>
    %24 = vector.shape_cast %23 : vector<1x1x32xf32> to vector<1x32xf32>
    %25 = vector.broadcast %24 : vector<1x32xf32> to vector<4x32xf32>
    %26 = arith.addf %22, %25 : vector<4x32xf32>
    %cst_27 = arith.constant dense<0.000000e+00> : vector<4x4xf32>
    %27 = tpu.matmul %12, %19, %cst_27 {dimension_numbers = #tpu.dot_dimension_numbers<[1], [1], [0], [0], [0, 0, 1, 0], [], []>} : vector<4x32xf32>, vector<4x32xf32>, vector<4x4xf32> -> vector<4x4xf32>
    %cst_28 = arith.constant 0.176776692 : f32
    %28 = vector.broadcast %cst_28 : f32 to vector<4x4xf32>
    %29 = arith.mulf %27, %28 : vector<4x4xf32>
    %cst_29 = arith.constant dense<0xFF800000> : vector<4xf32>
    %30 = vector.multi_reduction <maximumf>, %29, %cst_29 [1] : vector<4x4xf32> to vector<4xf32>
    %31 = vector.shape_cast %30 : vector<4xf32> to vector<4x1xf32>
    %32 = vector.broadcast %31 : vector<4x1xf32> to vector<4x4xf32>
    %33 = arith.subf %29, %32 : vector<4x4xf32>
    %34 = math.exp %33 : vector<4x4xf32>
    %cst_30 = arith.constant dense<0.000000e+00> : vector<4xf32>
    %35 = vector.multi_reduction <add>, %34, %cst_30 [1] : vector<4x4xf32> to vector<4xf32>
    %36 = vector.shape_cast %35 : vector<4xf32> to vector<4x1xf32>
    %37 = tpu.reciprocal %36 {approx = true} : vector<4x1xf32> -> vector<4x1xf32>
    %38 = vector.broadcast %37 : vector<4x1xf32> to vector<4x4xf32>
    %39 = arith.mulf %34, %38 : vector<4x4xf32>
    %cst_31 = arith.constant dense<0.000000e+00> : vector<4x32xf32>
    %40 = tpu.matmul %39, %26, %cst_31 {dimension_numbers = #tpu.dot_dimension_numbers<[1], [0], [0], [1], [0, 0, 1, 1], [], []>} : vector<4x4xf32>, vector<4x32xf32>, vector<4x32xf32> -> vector<4x32xf32>
    %cst_32 = arith.constant dense<0.000000e+00> : vector<4x32xf32>
    %41 = tpu.matmul %40, %4, %cst_32 {dimension_numbers = #tpu.dot_dimension_numbers<[1], [0], [0], [1], [0, 0, 1, 1], [], []>} : vector<4x32xf32>, vector<32x32xf32>, vector<4x32xf32> -> vector<4x32xf32>
    %42 = vector.broadcast %5 : vector<1x32xf32> to vector<4x32xf32>
    %43 = arith.addf %41, %42 : vector<4x32xf32>
    %44 = arith.addf %1, %43 : vector<4x32xf32>
    %c0_33 = arith.constant 0 : index
    %c0_34 = arith.constant 0 : index
    %45 = vector.load %arg7[%c0_33, %c0_34] : memref<1x32xf32, #tpu.memory_space<vmem>>, vector<1x32xf32>
    %c0_35 = arith.constant 0 : index
    %c0_36 = arith.constant 0 : index
    %46 = vector.load %arg8[%c0_35, %c0_36] : memref<1x32xf32, #tpu.memory_space<vmem>>, vector<1x32xf32>
    %cst_37 = arith.constant dense<0.000000e+00> : vector<4xf32>
    %47 = vector.multi_reduction <add>, %44, %cst_37 [1] : vector<4x32xf32> to vector<4xf32>
    %48 = vector.shape_cast %47 : vector<4xf32> to vector<4x1xf32>
    %cst_38 = arith.constant 3.200000e+01 : f32
    %49 = vector.broadcast %cst_38 : f32 to vector<4x1xf32>
    %50 = arith.divf %48, %49 : vector<4x1xf32>
    %51 = vector.broadcast %50 : vector<4x1xf32> to vector<4x32xf32>
    %52 = arith.subf %44, %51 : vector<4x32xf32>
    %53 = arith.mulf %52, %52 : vector<4x32xf32>
    %cst_39 = arith.constant dense<0.000000e+00> : vector<4xf32>
    %54 = vector.multi_reduction <add>, %53, %cst_39 [1] : vector<4x32xf32> to vector<4xf32>
    %55 = vector.shape_cast %54 : vector<4xf32> to vector<4x1xf32>
    %cst_40 = arith.constant 3.200000e+01 : f32
    %56 = vector.broadcast %cst_40 : f32 to vector<4x1xf32>
    %57 = arith.divf %55, %56 : vector<4x1xf32>
    %58 = vector.broadcast %50 : vector<4x1xf32> to vector<4x32xf32>
    %59 = arith.subf %44, %58 : vector<4x32xf32>
    %cst_41 = arith.constant 9.99999974E-6 : f32
    %60 = vector.broadcast %cst_41 : f32 to vector<4x1xf32>
    %61 = arith.addf %57, %60 : vector<4x1xf32>
    %62 = math.rsqrt %61 : vector<4x1xf32>
    %63 = vector.broadcast %62 : vector<4x1xf32> to vector<4x32xf32>
    %64 = arith.mulf %59, %63 : vector<4x32xf32>
    %65 = vector.broadcast %45 : vector<1x32xf32> to vector<4x32xf32>
    %66 = arith.mulf %64, %65 : vector<4x32xf32>
    %67 = vector.broadcast %46 : vector<1x32xf32> to vector<4x32xf32>
    %68 = arith.addf %66, %67 : vector<4x32xf32>
    %c0_42 = arith.constant 0 : index
    %c0_43 = arith.constant 0 : index
    %69 = vector.load %arg11[%c0_42, %c0_43] : memref<32x32xf32, #tpu.memory_space<vmem>>, vector<32x32xf32>
    %c0_44 = arith.constant 0 : index
    %c0_45 = arith.constant 0 : index
    %70 = vector.load %arg12[%c0_44, %c0_45] : memref<1x32xf32, #tpu.memory_space<vmem>>, vector<1x32xf32>
    %c0_46 = arith.constant 0 : index
    %c0_47 = arith.constant 0 : index
    %c0_48 = arith.constant 0 : index
    %71 = vector.load %arg9[%c0_46, %c0_47, %c0_48] : memref<3x32x32xf32, #tpu.memory_space<vmem>>, vector<1x32x32xf32>
    %72 = vector.shape_cast %71 : vector<1x32x32xf32> to vector<32x32xf32>
    %cst_49 = arith.constant dense<0.000000e+00> : vector<4x32xf32>
    %73 = tpu.matmul %68, %72, %cst_49 {dimension_numbers = #tpu.dot_dimension_numbers<[1], [0], [0], [1], [0, 0, 1, 1], [], []>} : vector<4x32xf32>, vector<32x32xf32>, vector<4x32xf32> -> vector<4x32xf32>
    %c0_50 = arith.constant 0 : index
    %c0_51 = arith.constant 0 : index
    %c0_52 = arith.constant 0 : index
    %74 = vector.load %arg10[%c0_50, %c0_51, %c0_52] : memref<3x1x32xf32, #tpu.memory_space<vmem>>, vector<1x1x32xf32>
    %75 = vector.shape_cast %74 : vector<1x1x32xf32> to vector<1x32xf32>
    %76 = vector.broadcast %75 : vector<1x32xf32> to vector<4x32xf32>
    %77 = arith.addf %73, %76 : vector<4x32xf32>
    %c1_53 = arith.constant 1 : index
    %c0_54 = arith.constant 0 : index
    %c0_55 = arith.constant 0 : index
    %78 = vector.load %arg9[%c1_53, %c0_54, %c0_55] : memref<3x32x32xf32, #tpu.memory_space<vmem>>, vector<1x32x32xf32>
    %79 = vector.shape_cast %78 : vector<1x32x32xf32> to vector<32x32xf32>
    %cst_56 = arith.constant dense<0.000000e+00> : vector<8x32xf32>
    %80 = tpu.matmul %3, %79, %cst_56 {dimension_numbers = #tpu.dot_dimension_numbers<[1], [0], [0], [1], [0, 0, 1, 1], [], []>} : vector<8x32xf32>, vector<32x32xf32>, vector<8x32xf32> -> vector<8x32xf32>
    %c1_57 = arith.constant 1 : index
    %c0_58 = arith.constant 0 : index
    %c0_59 = arith.constant 0 : index
    %81 = vector.load %arg10[%c1_57, %c0_58, %c0_59] : memref<3x1x32xf32, #tpu.memory_space<vmem>>, vector<1x1x32xf32>
    %82 = vector.shape_cast %81 : vector<1x1x32xf32> to vector<1x32xf32>
    %83 = vector.broadcast %82 : vector<1x32xf32> to vector<8x32xf32>
    %84 = arith.addf %80, %83 : vector<8x32xf32>
    %c2_60 = arith.constant 2 : index
    %c0_61 = arith.constant 0 : index
    %c0_62 = arith.constant 0 : index
    %85 = vector.load %arg9[%c2_60, %c0_61, %c0_62] : memref<3x32x32xf32, #tpu.memory_space<vmem>>, vector<1x32x32xf32>
    %86 = vector.shape_cast %85 : vector<1x32x32xf32> to vector<32x32xf32>
    %cst_63 = arith.constant dense<0.000000e+00> : vector<8x32xf32>
    %87 = tpu.matmul %3, %86, %cst_63 {dimension_numbers = #tpu.dot_dimension_numbers<[1], [0], [0], [1], [0, 0, 1, 1], [], []>} : vector<8x32xf32>, vector<32x32xf32>, vector<8x32xf32> -> vector<8x32xf32>
    %c2_64 = arith.constant 2 : index
    %c0_65 = arith.constant 0 : index
    %c0_66 = arith.constant 0 : index
    %88 = vector.load %arg10[%c2_64, %c0_65, %c0_66] : memref<3x1x32xf32, #tpu.memory_space<vmem>>, vector<1x1x32xf32>
    %89 = vector.shape_cast %88 : vector<1x1x32xf32> to vector<1x32xf32>
    %90 = vector.broadcast %89 : vector<1x32xf32> to vector<8x32xf32>
    %91 = arith.addf %87, %90 : vector<8x32xf32>
    %cst_67 = arith.constant dense<0.000000e+00> : vector<4x8xf32>
    %92 = tpu.matmul %77, %84, %cst_67 {dimension_numbers = #tpu.dot_dimension_numbers<[1], [1], [0], [0], [0, 0, 1, 0], [], []>} : vector<4x32xf32>, vector<8x32xf32>, vector<4x8xf32> -> vector<4x8xf32>
    %cst_68 = arith.constant 0.176776692 : f32
    %93 = vector.broadcast %cst_68 : f32 to vector<4x8xf32>
    %94 = arith.mulf %92, %93 : vector<4x8xf32>
    %cst_69 = arith.constant dense<0xFF800000> : vector<4xf32>
    %95 = vector.multi_reduction <maximumf>, %94, %cst_69 [1] : vector<4x8xf32> to vector<4xf32>
    %96 = vector.shape_cast %95 : vector<4xf32> to vector<4x1xf32>
    %97 = vector.broadcast %96 : vector<4x1xf32> to vector<4x8xf32>
    %98 = arith.subf %94, %97 : vector<4x8xf32>
    %99 = math.exp %98 : vector<4x8xf32>
    %cst_70 = arith.constant dense<0.000000e+00> : vector<4xf32>
    %100 = vector.multi_reduction <add>, %99, %cst_70 [1] : vector<4x8xf32> to vector<4xf32>
    %101 = vector.shape_cast %100 : vector<4xf32> to vector<4x1xf32>
    %102 = tpu.reciprocal %101 {approx = true} : vector<4x1xf32> -> vector<4x1xf32>
    %103 = vector.broadcast %102 : vector<4x1xf32> to vector<4x8xf32>
    %104 = arith.mulf %99, %103 : vector<4x8xf32>
    %cst_71 = arith.constant dense<0.000000e+00> : vector<4x32xf32>
    %105 = tpu.matmul %104, %91, %cst_71 {dimension_numbers = #tpu.dot_dimension_numbers<[1], [0], [0], [1], [0, 0, 1, 1], [], []>} : vector<4x8xf32>, vector<8x32xf32>, vector<4x32xf32> -> vector<4x32xf32>
    %cst_72 = arith.constant dense<0.000000e+00> : vector<4x32xf32>
    %106 = tpu.matmul %105, %69, %cst_72 {dimension_numbers = #tpu.dot_dimension_numbers<[1], [0], [0], [1], [0, 0, 1, 1], [], []>} : vector<4x32xf32>, vector<32x32xf32>, vector<4x32xf32> -> vector<4x32xf32>
    %107 = vector.broadcast %70 : vector<1x32xf32> to vector<4x32xf32>
    %108 = arith.addf %106, %107 : vector<4x32xf32>
    %109 = arith.addf %68, %108 : vector<4x32xf32>
    %c0_73 = arith.constant 0 : index
    %c0_74 = arith.constant 0 : index
    %110 = vector.load %arg13[%c0_73, %c0_74] : memref<1x32xf32, #tpu.memory_space<vmem>>, vector<1x32xf32>
    %c0_75 = arith.constant 0 : index
    %c0_76 = arith.constant 0 : index
    %111 = vector.load %arg14[%c0_75, %c0_76] : memref<1x32xf32, #tpu.memory_space<vmem>>, vector<1x32xf32>
    %cst_77 = arith.constant dense<0.000000e+00> : vector<4xf32>
    %112 = vector.multi_reduction <add>, %109, %cst_77 [1] : vector<4x32xf32> to vector<4xf32>
    %113 = vector.shape_cast %112 : vector<4xf32> to vector<4x1xf32>
    %cst_78 = arith.constant 3.200000e+01 : f32
    %114 = vector.broadcast %cst_78 : f32 to vector<4x1xf32>
    %115 = arith.divf %113, %114 : vector<4x1xf32>
    %116 = vector.broadcast %115 : vector<4x1xf32> to vector<4x32xf32>
    %117 = arith.subf %109, %116 : vector<4x32xf32>
    %118 = arith.mulf %117, %117 : vector<4x32xf32>
    %cst_79 = arith.constant dense<0.000000e+00> : vector<4xf32>
    %119 = vector.multi_reduction <add>, %118, %cst_79 [1] : vector<4x32xf32> to vector<4xf32>
    %120 = vector.shape_cast %119 : vector<4xf32> to vector<4x1xf32>
    %cst_80 = arith.constant 3.200000e+01 : f32
    %121 = vector.broadcast %cst_80 : f32 to vector<4x1xf32>
    %122 = arith.divf %120, %121 : vector<4x1xf32>
    %123 = vector.broadcast %115 : vector<4x1xf32> to vector<4x32xf32>
    %124 = arith.subf %109, %123 : vector<4x32xf32>
    %cst_81 = arith.constant 9.99999974E-6 : f32
    %125 = vector.broadcast %cst_81 : f32 to vector<4x1xf32>
    %126 = arith.addf %122, %125 : vector<4x1xf32>
    %127 = math.rsqrt %126 : vector<4x1xf32>
    %128 = vector.broadcast %127 : vector<4x1xf32> to vector<4x32xf32>
    %129 = arith.mulf %124, %128 : vector<4x32xf32>
    %130 = vector.broadcast %110 : vector<1x32xf32> to vector<4x32xf32>
    %131 = arith.mulf %129, %130 : vector<4x32xf32>
    %132 = vector.broadcast %111 : vector<1x32xf32> to vector<4x32xf32>
    %133 = arith.addf %131, %132 : vector<4x32xf32>
    %c0_82 = arith.constant 0 : index
    %c0_83 = arith.constant 0 : index
    %134 = vector.load %arg15[%c0_82, %c0_83] : memref<32x96xf32, #tpu.memory_space<vmem>>, vector<32x96xf32>
    %cst_84 = arith.constant dense<0.000000e+00> : vector<4x96xf32>
    %135 = tpu.matmul %133, %134, %cst_84 {dimension_numbers = #tpu.dot_dimension_numbers<[1], [0], [0], [1], [0, 0, 1, 1], [], []>} : vector<4x32xf32>, vector<32x96xf32>, vector<4x96xf32> -> vector<4x96xf32>
    %c0_85 = arith.constant 0 : index
    %c0_86 = arith.constant 0 : index
    %136 = vector.load %arg16[%c0_85, %c0_86] : memref<1x96xf32, #tpu.memory_space<vmem>>, vector<1x96xf32>
    %137 = vector.broadcast %136 : vector<1x96xf32> to vector<4x96xf32>
    %138 = arith.addf %135, %137 : vector<4x96xf32>
    %cst_87 = arith.constant 0.000000e+00 : f32
    %139 = vector.broadcast %cst_87 : f32 to vector<4x96xf32>
    %140 = arith.maximumf %138, %139 : vector<4x96xf32>
    %c0_88 = arith.constant 0 : index
    %c0_89 = arith.constant 0 : index
    %141 = vector.load %arg17[%c0_88, %c0_89] : memref<96x32xf32, #tpu.memory_space<vmem>>, vector<96x32xf32>
    %cst_90 = arith.constant dense<0.000000e+00> : vector<4x32xf32>
    %142 = tpu.matmul %140, %141, %cst_90 {dimension_numbers = #tpu.dot_dimension_numbers<[1], [0], [0], [1], [0, 0, 1, 1], [], []>} : vector<4x96xf32>, vector<96x32xf32>, vector<4x32xf32> -> vector<4x32xf32>
    %c0_91 = arith.constant 0 : index
    %c0_92 = arith.constant 0 : index
    %143 = vector.load %arg18[%c0_91, %c0_92] : memref<1x32xf32, #tpu.memory_space<vmem>>, vector<1x32xf32>
    %144 = vector.broadcast %143 : vector<1x32xf32> to vector<4x32xf32>
    %145 = arith.addf %142, %144 : vector<4x32xf32>
    %146 = arith.addf %133, %145 : vector<4x32xf32>
    %c0_93 = arith.constant 0 : index
    %c0_94 = arith.constant 0 : index
    %147 = vector.load %arg19[%c0_93, %c0_94] : memref<1x32xf32, #tpu.memory_space<vmem>>, vector<1x32xf32>
    %c0_95 = arith.constant 0 : index
    %c0_96 = arith.constant 0 : index
    %148 = vector.load %arg20[%c0_95, %c0_96] : memref<1x32xf32, #tpu.memory_space<vmem>>, vector<1x32xf32>
    %cst_97 = arith.constant dense<0.000000e+00> : vector<4xf32>
    %149 = vector.multi_reduction <add>, %146, %cst_97 [1] : vector<4x32xf32> to vector<4xf32>
    %150 = vector.shape_cast %149 : vector<4xf32> to vector<4x1xf32>
    %cst_98 = arith.constant 3.200000e+01 : f32
    %151 = vector.broadcast %cst_98 : f32 to vector<4x1xf32>
    %152 = arith.divf %150, %151 : vector<4x1xf32>
    %153 = vector.broadcast %152 : vector<4x1xf32> to vector<4x32xf32>
    %154 = arith.subf %146, %153 : vector<4x32xf32>
    %155 = arith.mulf %154, %154 : vector<4x32xf32>
    %cst_99 = arith.constant dense<0.000000e+00> : vector<4xf32>
    %156 = vector.multi_reduction <add>, %155, %cst_99 [1] : vector<4x32xf32> to vector<4xf32>
    %157 = vector.shape_cast %156 : vector<4xf32> to vector<4x1xf32>
    %cst_100 = arith.constant 3.200000e+01 : f32
    %158 = vector.broadcast %cst_100 : f32 to vector<4x1xf32>
    %159 = arith.divf %157, %158 : vector<4x1xf32>
    %160 = vector.broadcast %152 : vector<4x1xf32> to vector<4x32xf32>
    %161 = arith.subf %146, %160 : vector<4x32xf32>
    %cst_101 = arith.constant 9.99999974E-6 : f32
    %162 = vector.broadcast %cst_101 : f32 to vector<4x1xf32>
    %163 = arith.addf %159, %162 : vector<4x1xf32>
    %164 = math.rsqrt %163 : vector<4x1xf32>
    %165 = vector.broadcast %164 : vector<4x1xf32> to vector<4x32xf32>
    %166 = arith.mulf %161, %165 : vector<4x32xf32>
    %167 = vector.broadcast %147 : vector<1x32xf32> to vector<4x32xf32>
    %168 = arith.mulf %166, %167 : vector<4x32xf32>
    %169 = vector.broadcast %148 : vector<1x32xf32> to vector<4x32xf32>
    %170 = arith.addf %168, %169 : vector<4x32xf32>
    %c0_102 = arith.constant 0 : index
    %c0_103 = arith.constant 0 : index
    %c0_104 = arith.constant 0 : index
    %171 = vector.load %arg21[%c0_102, %c0_103, %c0_104] : memref<1x4x32xf32, #tpu.memory_space<vmem>>, vector<1x4x32xf32>
    %172 = vector.shape_cast %171 : vector<1x4x32xf32> to vector<4x32xf32>
    %173 = vector.shape_cast %170 : vector<4x32xf32> to vector<1x4x32xf32>
    tpu.vector_store %arg21[%c0_102, %c0_103, %c0_104], %173 {strides = array<i32>} : memref<1x4x32xf32, #tpu.memory_space<vmem>>, vector<1x4x32xf32>,
    return
  }
  func.func @transform_0(%arg0: i32) -> (i32, i32, i32) {
    %c0_i32 = arith.constant 0 : i32
    %c0_i32_0 = arith.constant 0 : i32
    %c0_i32_1 = arith.constant 0 : i32
    return %arg0, %c0_i32, %c0_i32_0 : i32, i32, i32
  }
  func.func @transform_1(%arg0: i32) -> (i32, i32, i32) {
    %c0_i32 = arith.constant 0 : i32
    %c0_i32_0 = arith.constant 0 : i32
    %c0_i32_1 = arith.constant 0 : i32
    return %arg0, %c0_i32, %c0_i32_0 : i32, i32, i32
  }
  func.func @transform_2(%arg0: i32) -> (i32, i32, i32) {
    %c0_i32 = arith.constant 0 : i32
    %c0_i32_0 = arith.constant 0 : i32
    %c0_i32_1 = arith.constant 0 : i32
    %c0_i32_2 = arith.constant 0 : i32
    return %c0_i32, %c0_i32_0, %c0_i32_1 : i32, i32, i32
  }
  func.func @transform_3(%arg0: i32) -> (i32, i32, i32) {
    %c0_i32 = arith.constant 0 : i32
    %c0_i32_0 = arith.constant 0 : i32
    %c0_i32_1 = arith.constant 0 : i32
    %c0_i32_2 = arith.constant 0 : i32
    return %c0_i32, %c0_i32_0, %c0_i32_1 : i32, i32, i32
  }
  func.func @transform_4(%arg0: i32) -> (i32, i32) {
    %c0_i32 = arith.constant 0 : i32
    %c0_i32_0 = arith.constant 0 : i32
    %c0_i32_1 = arith.constant 0 : i32
    return %c0_i32, %c0_i32_0 : i32, i32
  }
  func.func @transform_5(%arg0: i32) -> (i32, i32) {
    %c0_i32 = arith.constant 0 : i32
    %c0_i32_0 = arith.constant 0 : i32
    %c0_i32_1 = arith.constant 0 : i32
    return %c0_i32, %c0_i32_0 : i32, i32
  }
  func.func @transform_6(%arg0: i32) -> (i32, i32) {
    %c0_i32 = arith.constant 0 : i32
    %c0_i32_0 = arith.constant 0 : i32
    %c0_i32_1 = arith.constant 0 : i32
    return %c0_i32, %c0_i32_0 : i32, i32
  }
  func.func @transform_7(%arg0: i32) -> (i32, i32) {
    %c0_i32 = arith.constant 0 : i32
    %c0_i32_0 = arith.constant 0 : i32
    %c0_i32_1 = arith.constant 0 : i32
    return %c0_i32, %c0_i32_0 : i32, i32
  }
  func.func @transform_8(%arg0: i32) -> (i32, i32, i32) {
    %c0_i32 = arith.constant 0 : i32
    %c0_i32_0 = arith.constant 0 : i32
    %c0_i32_1 = arith.constant 0 : i32
    %c0_i32_2 = arith.constant 0 : i32
    return %c0_i32, %c0_i32_0, %c0_i32_1 : i32, i32, i32
  }
  func.func @transform_9(%arg0: i32) -> (i32, i32, i32) {
    %c0_i32 = arith.constant 0 : i32
    %c0_i32_0 = arith.constant 0 : i32
    %c0_i32_1 = arith.constant 0 : i32
    %c0_i32_2 = arith.constant 0 : i32
    return %c0_i32, %c0_i32_0, %c0_i32_1 : i32, i32, i32
  }
  func.func @transform_10(%arg0: i32) -> (i32, i32) {
    %c0_i32 = arith.constant 0 : i32
    %c0_i32_0 = arith.constant 0 : i32
    %c0_i32_1 = arith.constant 0 : i32
    return %c0_i32, %c0_i32_0 : i32, i32
  }
  func.func @transform_11(%arg0: i32) -> (i32, i32) {
    %c0_i32 = arith.constant 0 : i32
    %c0_i32_0 = arith.constant 0 : i32
    %c0_i32_1 = arith.constant 0 : i32
    return %c0_i32, %c0_i32_0 : i32, i32
  }
  func.func @transform_12(%arg0: i32) -> (i32, i32) {
    %c0_i32 = arith.constant 0 : i32
    %c0_i32_0 = arith.constant 0 : i32
    %c0_i32_1 = arith.constant 0 : i32
    return %c0_i32, %c0_i32_0 : i32, i32
  }
  func.func @transform_13(%arg0: i32) -> (i32, i32) {
    %c0_i32 = arith.constant 0 : i32
    %c0_i32_0 = arith.constant 0 : i32
    %c0_i32_1 = arith.constant 0 : i32
    return %c0_i32, %c0_i32_0 : i32, i32
  }
  func.func @transform_14(%arg0: i32) -> (i32, i32) {
    %c0_i32 = arith.constant 0 : i32
    %c0_i32_0 = arith.constant 0 : i32
    %c0_i32_1 = arith.constant 0 : i32
    return %c0_i32, %c0_i32_0 : i32, i32
  }
  func.func @transform_15(%arg0: i32) -> (i32, i32) {
    %c0_i32 = arith.constant 0 : i32
    %c0_i32_0 = arith.constant 0 : i32
    %c0_i32_1 = arith.constant 0 : i32
    return %c0_i32, %c0_i32_0 : i32, i32
  }
  func.func @transform_16(%arg0: i32) -> (i32, i32) {
    %c0_i32 = arith.constant 0 : i32
    %c0_i32_0 = arith.constant 0 : i32
    %c0_i32_1 = arith.constant 0 : i32
    return %c0_i32, %c0_i32_0 : i32, i32
  }
  func.func @transform_17(%arg0: i32) -> (i32, i32) {
    %c0_i32 = arith.constant 0 : i32
    %c0_i32_0 = arith.constant 0 : i32
    %c0_i32_1 = arith.constant 0 : i32
    return %c0_i32, %c0_i32_0 : i32, i32
  }
  func.func @transform_18(%arg0: i32) -> (i32, i32) {
    %c0_i32 = arith.constant 0 : i32
    %c0_i32_0 = arith.constant 0 : i32
    %c0_i32_1 = arith.constant 0 : i32
    return %c0_i32, %c0_i32_0 : i32, i32
  }
  func.func @transform_19(%arg0: i32) -> (i32, i32) {
    %c0_i32 = arith.constant 0 : i32
    %c0_i32_0 = arith.constant 0 : i32
    %c0_i32_1 = arith.constant 0 : i32
    return %c0_i32, %c0_i32_0 : i32, i32
  }
  func.func @transform_20(%arg0: i32) -> (i32, i32, i32) {
    %c0_i32 = arith.constant 0 : i32
    %c0_i32_0 = arith.constant 0 : i32
    %c0_i32_1 = arith.constant 0 : i32
    return %arg0, %c0_i32, %c0_i32_0 : i32, i32, i32
  }
}

module attributes {stable_mosaic.version = 11 : i64} {
  func.func @_layernorm_kernel(%arg0: memref<8x32xf32, #tpu.memory_space<vmem>>, %arg1: memref<1x32xf32, #tpu.memory_space<vmem>>, %arg2: memref<1x32xf32, #tpu.memory_space<vmem>>, %arg3: memref<8x32xf32, #tpu.memory_space<vmem>>) attributes {dimension_semantics = [], scalar_prefetch = 0 : i64, scratch_operands = 0 : i64, tpu.core_type = #tpu.core_type<tc>} {
    %c0 = arith.constant 0 : index
    %c0_0 = arith.constant 0 : index
    %0 = vector.load %arg0[%c0, %c0_0] : memref<8x32xf32, #tpu.memory_space<vmem>>, vector<8x32xf32>
    %c0_1 = arith.constant 0 : index
    %c0_2 = arith.constant 0 : index
    %1 = vector.load %arg1[%c0_1, %c0_2] : memref<1x32xf32, #tpu.memory_space<vmem>>, vector<1x32xf32>
    %c0_3 = arith.constant 0 : index
    %c0_4 = arith.constant 0 : index
    %2 = vector.load %arg2[%c0_3, %c0_4] : memref<1x32xf32, #tpu.memory_space<vmem>>, vector<1x32xf32>
    %cst = arith.constant dense<0.000000e+00> : vector<8xf32>
    %3 = vector.multi_reduction <add>, %0, %cst [1] : vector<8x32xf32> to vector<8xf32>
    %4 = vector.shape_cast %3 : vector<8xf32> to vector<8x1xf32>
    %cst_5 = arith.constant 3.200000e+01 : f32
    %5 = vector.broadcast %cst_5 : f32 to vector<8x1xf32>
    %6 = arith.divf %4, %5 : vector<8x1xf32>
    %7 = vector.broadcast %6 : vector<8x1xf32> to vector<8x32xf32>
    %8 = arith.subf %0, %7 : vector<8x32xf32>
    %9 = arith.mulf %8, %8 : vector<8x32xf32>
    %cst_6 = arith.constant dense<0.000000e+00> : vector<8xf32>
    %10 = vector.multi_reduction <add>, %9, %cst_6 [1] : vector<8x32xf32> to vector<8xf32>
    %11 = vector.shape_cast %10 : vector<8xf32> to vector<8x1xf32>
    %cst_7 = arith.constant 3.200000e+01 : f32
    %12 = vector.broadcast %cst_7 : f32 to vector<8x1xf32>
    %13 = arith.divf %11, %12 : vector<8x1xf32>
    %14 = vector.broadcast %6 : vector<8x1xf32> to vector<8x32xf32>
    %15 = arith.subf %0, %14 : vector<8x32xf32>
    %cst_8 = arith.constant 9.99999974E-6 : f32
    %16 = vector.broadcast %cst_8 : f32 to vector<8x1xf32>
    %17 = arith.addf %13, %16 : vector<8x1xf32>
    %18 = math.rsqrt %17 : vector<8x1xf32>
    %19 = vector.broadcast %18 : vector<8x1xf32> to vector<8x32xf32>
    %20 = arith.mulf %15, %19 : vector<8x32xf32>
    %21 = vector.broadcast %1 : vector<1x32xf32> to vector<8x32xf32>
    %22 = arith.mulf %20, %21 : vector<8x32xf32>
    %23 = vector.broadcast %2 : vector<1x32xf32> to vector<8x32xf32>
    %24 = arith.addf %22, %23 : vector<8x32xf32>
    %c0_9 = arith.constant 0 : index
    %c0_10 = arith.constant 0 : index
    %25 = vector.load %arg3[%c0_9, %c0_10] : memref<8x32xf32, #tpu.memory_space<vmem>>, vector<8x32xf32>
    tpu.vector_store %arg3[%c0_9, %c0_10], %24 {strides = array<i32>} : memref<8x32xf32, #tpu.memory_space<vmem>>, vector<8x32xf32>,
    return
  }
}

module attributes {stable_mosaic.version = 11 : i64} {
  func.func @_head_kernel(%arg0: memref<2x4x32xf32, #tpu.memory_space<vmem>>, %arg1: memref<4x32xf32, #tpu.memory_space<vmem>>, %arg2: memref<1x4xf32, #tpu.memory_space<vmem>>, %arg3: memref<1x4xf32, #tpu.memory_space<vmem>>, %arg4: memref<2x1xf32, #tpu.memory_space<vmem>>) attributes {dimension_semantics = [], scalar_prefetch = 0 : i64, scratch_operands = 0 : i64, tpu.core_type = #tpu.core_type<tc>} {
    %c0 = arith.constant 0 : index
    %c0_0 = arith.constant 0 : index
    %c0_1 = arith.constant 0 : index
    %0 = vector.load %arg0[%c0, %c0_0, %c0_1] : memref<2x4x32xf32, #tpu.memory_space<vmem>>, vector<2x4x32xf32>
    %c0_2 = arith.constant 0 : index
    %c0_3 = arith.constant 0 : index
    %1 = vector.load %arg1[%c0_2, %c0_3] : memref<4x32xf32, #tpu.memory_space<vmem>>, vector<4x32xf32>
    %2 = vector.shape_cast %1 : vector<4x32xf32> to vector<1x4x32xf32>
    %3 = vector.broadcast %2 : vector<1x4x32xf32> to vector<2x4x32xf32>
    %4 = arith.mulf %0, %3 : vector<2x4x32xf32>
    %cst = arith.constant dense<0.000000e+00> : vector<2x4xf32>
    %5 = vector.multi_reduction <add>, %4, %cst [2] : vector<2x4x32xf32> to vector<2x4xf32>
    %c0_4 = arith.constant 0 : index
    %c0_5 = arith.constant 0 : index
    %6 = vector.load %arg2[%c0_4, %c0_5] : memref<1x4xf32, #tpu.memory_space<vmem>>, vector<1x4xf32>
    %7 = vector.broadcast %6 : vector<1x4xf32> to vector<2x4xf32>
    %8 = arith.addf %5, %7 : vector<2x4xf32>
    %cst_6 = arith.constant 0.000000e+00 : f32
    %9 = vector.broadcast %cst_6 : f32 to vector<2x4xf32>
    %10 = arith.subf %9, %8 : vector<2x4xf32>
    %11 = math.exp %10 : vector<2x4xf32>
    %cst_7 = arith.constant 1.000000e+00 : f32
    %12 = vector.broadcast %cst_7 : f32 to vector<2x4xf32>
    %13 = arith.addf %12, %11 : vector<2x4xf32>
    %14 = tpu.reciprocal %13 {approx = true} : vector<2x4xf32> -> vector<2x4xf32>
    %cst_8 = arith.constant dense<0.000000e+00> : vector<2xf32>
    %15 = vector.multi_reduction <add>, %14, %cst_8 [1] : vector<2x4xf32> to vector<2xf32>
    %16 = vector.shape_cast %15 : vector<2xf32> to vector<2x1xf32>
    %17 = tpu.reciprocal %16 {approx = true} : vector<2x1xf32> -> vector<2x1xf32>
    %18 = vector.broadcast %17 : vector<2x1xf32> to vector<2x4xf32>
    %19 = arith.mulf %14, %18 : vector<2x4xf32>
    %c0_9 = arith.constant 0 : index
    %c0_10 = arith.constant 0 : index
    %20 = vector.load %arg3[%c0_9, %c0_10] : memref<1x4xf32, #tpu.memory_space<vmem>>, vector<1x4xf32>
    %21 = vector.broadcast %20 : vector<1x4xf32> to vector<2x4xf32>
    %22 = arith.mulf %21, %19 : vector<2x4xf32>
    %cst_11 = arith.constant dense<0.000000e+00> : vector<2xf32>
    %23 = vector.multi_reduction <add>, %22, %cst_11 [1] : vector<2x4xf32> to vector<2xf32>
    %24 = vector.shape_cast %23 : vector<2xf32> to vector<2x1xf32>
    %c0_12 = arith.constant 0 : index
    %c0_13 = arith.constant 0 : index
    %25 = vector.load %arg4[%c0_12, %c0_13] : memref<2x1xf32, #tpu.memory_space<vmem>>, vector<2x1xf32>
    tpu.vector_store %arg4[%c0_12, %c0_13], %24 {strides = array<i32>} : memref<2x1xf32, #tpu.memory_space<vmem>>, vector<2x1xf32>,
    return
  }
}

</mosaic_0001>

<bundles_post_ra>
// kernel: gdlt_forward.9
= control target key start
LH: loop header
LB: loop body
LE: loop exit
PB: predicated region body
PF: predicated region fallthrough
CT: control target
= control target key end

     0   :  { %vm18_vm0 = vcmask 261120   ;;  %s118_s0 = inlined_call_operand.vmem [shape: f32[16,32], index: 0, kind: input, shape index: {}]   ;;  %s119_s1 = inlined_call_operand.vmem [shape: f32[1,32], index: 1, kind: input, shape index: {}]   ;;  %s120_s2 = inlined_call_operand.vmem [shape: f32[1,32], index: 2, kind: input, shape index: {}]   ;;  %s121_s3 = inlined_call_operand.vmem [shape: f32[16,32], index: 3, kind: output, shape index: {}]  }
   0x1   :  { %v14_v0 = vld [vmem:[%s118_s0] sm:$0xff]  ;;  %v15_v1 = vld [vmem:[%s118_s0 + $0x8] sm:$0xff] }
   0x2   :  { %v19_v2 = vsel %vm18_vm0, %v14_v0, 0.0  ;;  %v22_v3 = vsel %vm18_vm0, %v15_v1, 0.0  ;;  %v68_v21 = vld [vmem:[%s119_s1] ss:$0 sm:$0xff] }
   0x3   :  { %20 = vadd.xlane.f32.xlu0 %v19_v2  ;;  %v69_v23 = vld [vmem:[%s120_s2] ss:$0 sm:$0xff] }
   0x7   :  { %23 = vadd.xlane.f32.xlu0 %v22_v3 }
  0x90   :  { %v21_v4 = vpop.xlane.xlu0 %20 }
  0x91   :  { %v26_v5 = vmul.f32 0.03125, %v21_v4 }
  0x93   :  { %v28_v6 = vsub.f32 %v14_v0, %v26_v5 }
  0x94   :  { %v24_v7 = vpop.xlane.xlu0 %23 }
  0x95   :  { %v27_v8 = vmul.f32 0.03125, %v24_v7  ;;  %v30_v9 = vmul.f32 %v28_v6, %v28_v6 }
  0x97   :  { %v29_v10 = vsub.f32 %v15_v1, %v27_v8  ;;  %v32_v11 = vsel %vm18_vm0, %v30_v9, 0.0 }
  0x98   :  { %33 = vadd.xlane.f32.xlu1 %v32_v11 }
  0x99   :  { %v31_v12 = vmul.f32 %v29_v10, %v29_v10 }
  0x9b   :  { %v35_v13 = vsel %vm18_vm0, %v31_v12, 0.0 }
  0x9c   :  { %36 = vadd.xlane.f32.xlu1 %v35_v13 }
 0x125   :  { %v34_v14 = vpop.xlane.xlu1 %33 }
 0x126   :  { %v38_v15 = vmul.f32 0.03125, %v34_v14 }
 0x128   :  { %v40_v16 = vadd.f32 1e-05, %v38_v15 }
 0x129   :  { %v37_v17 = vpop.xlane.xlu1 %36 }
 0x12a   :  { %70 = vrsqrt.f32 %v40_v16  ;;  %v39_v18 = vmul.f32 0.03125, %v37_v17 }
 0x12c   :  { %v41_v19 = vadd.f32 1e-05, %v39_v18 }
 0x12e   :  { %72 = vrsqrt.f32 %v41_v19 }
 0x134   :  { %v71_v20 = vpop.eup %70 }
 0x135   :  { %v44_v22 = vmul.f32 %v71_v20, %v28_v6 }
 0x137   :  { %v52_v24 = vmul.f32 %v68_v21, %v44_v22 }
 0x138   :  { %v73_v25 = vpop.eup %72 }
 0x139   :  { %v60_v26 = vadd.f32 %v69_v23, %v52_v24  ;;  %v45_v27 = vmul.f32 %v73_v25, %v29_v10 }
 0x13b   :  { %62 = vst.msk [vmem:[%s121_s3] sm:$0xff] %vm18_vm0, %v60_v26  ;;  %v53_v28 = vmul.f32 %v68_v21, %v45_v27 }
 0x13d   :  { %v61_v29 = vadd.f32 %v69_v23, %v53_v28 }
 0x13f   :  { %63 = vst.msk [vmem:[%s121_s3 + $0x8] sm:$0xff] %vm18_vm0, %v61_v29 }

// kernel: gdlt_forward.7
= control target key start
LH: loop header
LB: loop body
LE: loop exit
PB: predicated region body
PF: predicated region fallthrough
CT: control target
= control target key end

     0   :  { %vm49_vm0 = vcmask 523264   ;;  %vm131_vm1 = vcmask 261120   ;;  %s542_s1 = inlined_call_operand.vmem [shape: f32[64,32], index: 1, kind: input, shape index: {}]   ;;  %s543_s0 = inlined_call_operand.vmem [shape: f32[16,64], index: 0, kind: input, shape index: {}]   ;;  %s544_s5 = inlined_call_operand.vmem [shape: f32[32,32], index: 5, kind: input, shape index: {}]   ;;  %s545_s2 = inlined_call_operand.vmem [shape: f32[1,32], index: 2, kind: input, shape index: {}]   ;;  %s546_s3 = inlined_call_operand.vmem [shape: f32[1,32], index: 3, kind: input, shape index: {}]   ;;  %s547_s4 = inlined_call_operand.vmem [shape: f32[1,32], index: 4, kind: input, shape index: {}]   ;;  %s548_s6 = inlined_call_operand.vmem [shape: f32[1,32], index: 6, kind: input, shape index: {}]   ;;  %s549_s7 = inlined_call_operand.vmem [shape: f32[1,32], index: 7, kind: input, shape index: {}]   ;;  %s550_s8 = inlined_call_operand.vmem [shape: f32[1,32], index: 8, kind: input, shape index: {}]   ;;  %s551_s9 = inlined_call_operand.vmem [shape: f32[16,32], index: 9, kind: output, shape index: {}]  }
   0x1   :  { %v34_v0 = vld [vmem:[%s542_s1] sm:$0xff]  ;;  %v35_v1 = vld [vmem:[%s542_s1 + $0x8] sm:$0xff]  ;;  %v36_v2 = vld [vmem:[%s542_s1 + $0x10] sm:$0xff] }
   0x2   :  { %v384_v3 = vpack.c.bf16 %v35_v1, %v34_v0  ;;  %v37_v4 = vld [vmem:[%s542_s1 + $0x18] sm:$0xff]  ;;  %v38_v6 = vld [vmem:[%s542_s1 + $0x20] sm:$0xff]  ;;  %v39_v7 = vld [vmem:[%s542_s1 + $0x28] sm:$0xff] }
   0x3   :  { %v388_v5 = vpack.c.bf16 %v37_v4, %v36_v2  ;;  %v32_v8 = vld [vmem:[%s543_s0] sm:$0xff]  ;;  %v392_v9 = vpack.c.bf16 %v39_v7, %v38_v6  ;;  %v40_v10 = vld [vmem:[%s542_s1 + $0x30] sm:$0xff]  ;;  %v41_v11 = vld [vmem:[%s542_s1 + $0x38] sm:$0xff] }
   0x4   :  { %385 = vmatprep.subr.bf16.mxu0 %v384_v3  ;;  %370 = vmatprep.mubr.msk.f32.mxu0 %vm49_vm0, %v32_v8  ;;  %v396_v12 = vpack.c.bf16 %v41_v11, %v40_v10  ;;  %v33_v13 = vld [vmem:[%s543_s0 + $0x8] sm:$0xff]  ;;  %v182_v14 = vld [vmem:[%s544_s5] sm:$0xff]  ;;  %v184_v16 = vld [vmem:[%s544_s5 + $0x10] sm:$0xff] }
   0x5   :  { %387 = vmatpush3.bf16.msra.mxu0 %v384_v3  ;;  %v183_v15 = vld [vmem:[%s544_s5 + $0x8] sm:$0xff]  ;;  %v185_v18 = vld [vmem:[%s544_s5 + $0x18] sm:$0xff]  ;;  %v328_v20 = vld [vmem:[%s545_s2] ss:$0 sm:$0xff] }
   0x6   :  { %389 = vmatprep.subr.bf16.mxu0 %v388_v5  ;;  %v400_v17 = vpack.c.bf16 %v183_v15, %v182_v14  ;;  %v404_v19 = vpack.c.bf16 %v185_v18, %v184_v16  ;;  %v331_v53 = vld [vmem:[%s546_s3] ss:$0 sm:$0xff] }
   0x7   :  { %v332_v56 = vld [vmem:[%s547_s4] ss:$0 sm:$0xff] }
   0x8   :  { %401 = vmatprep.subr.bf16.mxu1 %v400_v17  ;;  %v333_v63 = vld [vmem:[%s548_s6] ss:$0 sm:$0xff] }
   0x9   :  { %391 = vmatpush3.bf16.msra.mxu0 %v388_v5  ;;  %403 = vmatpush3.bf16.msra.mxu1 %v400_v17 }
   0xa   :  { %393 = vmatprep.subr.bf16.mxu0 %v392_v9  ;;  %405 = vmatprep.subr.bf16.mxu1 %v404_v19 }
   0xd   :  { %395 = vmatpush3.bf16.msra.mxu0 %v392_v9  ;;  %407 = vmatpush3.bf16.msra.mxu1 %v404_v19 }
   0xe   :  { %397 = vmatprep.subr.bf16.mxu0 %v396_v12 }
  0x11   :  { %399 = vmatpush3.bf16.msra.mxu0 %v396_v12 }
  0x14   :  { %371 = vmatmul.mubr.msk.f32.vlgmr.msra.gmra.mrb[0].mxu0 %vm49_vm0, %v33_v13 }
  0xe7   :  { %v372_v21 = vpop.f32.mrb[0].mxu0 }
  0xe8   :  { %v128_v22 = vadd.f32 %v372_v21, %v328_v20  ;;  %v122_v23 = vpop.f32.mrb[1].mxu0 }
  0xe9   :  { %v123_v24 = vadd.f32 %v328_v20, %v122_v23 }
  0xea   :  { %v133_v25 = vsel %vm131_vm1, %v128_v22, 0.0  ;;  %v143_v26 = vmul.f32 %v128_v22, %v128_v22 }
  0xeb   :  { %v132_v27 = vsel %vm131_vm1, %v123_v24, 0.0  ;;  %v142_v28 = vmul.f32 %v123_v24, %v123_v24 }
  0xec   :  { %v145_v29 = vsel %vm131_vm1, %v143_v26, 0.0  ;;  %v134_v30 = vadd.f32 %v133_v25, %v132_v27 }
  0xed   :  { %v144_v31 = vsel %vm131_vm1, %v142_v28, 0.0 }
  0xee   :  { %v135_v32 = vrot.slane %v134_v30, 4  ;;  %v146_v33 = vadd.f32 %v145_v29, %v144_v31 }
  0xf0   :  { %v136_v34 = vadd.f32 %v135_v32, %v134_v30  ;;  %v147_v35 = vrot.slane %v146_v33, 4  ;;  %v336_v32 = vld [vmem:[%s549_s7] ss:$0 sm:$0xff] }
  0xf2   :  { %v137_v36 = vrot.slane %v136_v34, 2  ;;  %v148_v37 = vadd.f32 %v147_v35, %v146_v33  ;;  %v337_v35 = vld [vmem:[%s550_s8] ss:$0 sm:$0xff] }
  0xf4   :  { %v138_v38 = vadd.f32 %v137_v36, %v136_v34  ;;  %v149_v39 = vrot.slane %v148_v37, 2 }
  0xf6   :  { %v139_v40 = vrot.slane %v138_v38, 1  ;;  %v150_v41 = vadd.f32 %v149_v39, %v148_v37 }
  0xf8   :  { %v140_v42 = vadd.f32 %v139_v40, %v138_v38  ;;  %v151_v43 = vrot.slane %v150_v41, 1 }
  0xfa   :  { %v141_v44 = vmul.f32 0.0625, %v140_v42  ;;  %v152_v45 = vadd.f32 %v151_v43, %v150_v41 }
  0xfc   :  { %v153_v46 = vmul.f32 0.0625, %v152_v45  ;;  %v154_v47 = vmul.f32 %v141_v44, %v141_v44  ;;  %v156_v48 = vsub.f32 %v123_v24, %v141_v44  ;;  %v157_v49 = vsub.f32 %v128_v22, %v141_v44 }
  0xfe   :  { %v155_v50 = vsub.f32 %v153_v46, %v154_v47 }
 0x100   :  { %v158_v51 = vadd.f32 1e-05, %v155_v50 }
 0x102   :  { %408 = vrsqrt.f32 %v158_v51 }
 0x10c   :  { %v409_v52 = vpop.eup %408 }
 0x10d   :  { %v160_v54 = vmul.f32 %v409_v52, %v156_v48  ;;  %v161_v55 = vmul.f32 %v409_v52, %v157_v49 }
 0x10f   :  { %v169_v57 = vmul.f32 %v331_v53, %v160_v54  ;;  %v170_v58 = vmul.f32 %v331_v53, %v161_v55 }
 0x111   :  { %v178_v59 = vadd.f32 %v332_v56, %v169_v57  ;;  %v179_v60 = vadd.f32 %v332_v56, %v170_v58 }
 0x113   :  { %v180_v61 = vmax.f32 %v178_v59, 0.0  ;;  %v181_v62 = vmax.f32 %v179_v60, 0.0 }
 0x115   :  { %381 = vmatprep.mubr.msk.f32.mxu1 %vm131_vm1, %v180_v61 }
 0x116   :  { %382 = vmatmul.mubr.msk.f32.vlgmr.msra.gmra.mrb[0].mxu1 %vm131_vm1, %v181_v62 }
 0x1e9   :  { %v383_v0 = vpop.f32.mrb[0].mxu1 }
 0x1ea   :  { %v271_v1 = vadd.f32 %v383_v0, %v333_v63  ;;  %v265_v2 = vpop.f32.mrb[1].mxu1 }
 0x1eb   :  { %v266_v3 = vadd.f32 %v333_v63, %v265_v2 }
 0x1ec   :  { %v275_v4 = vsel %vm131_vm1, %v271_v1, 0.0  ;;  %v285_v5 = vmul.f32 %v271_v1, %v271_v1 }
 0x1ed   :  { %v274_v6 = vsel %vm131_vm1, %v266_v3, 0.0  ;;  %v284_v7 = vmul.f32 %v266_v3, %v266_v3 }
 0x1ee   :  { %v287_v8 = vsel %vm131_vm1, %v285_v5, 0.0  ;;  %v276_v9 = vadd.f32 %v275_v4, %v274_v6 }
 0x1ef   :  { %v286_v10 = vsel %vm131_vm1, %v284_v7, 0.0 }
 0x1f0   :  { %v277_v11 = vrot.slane %v276_v9, 4  ;;  %v288_v12 = vadd.f32 %v287_v8, %v286_v10 }
 0x1f2   :  { %v278_v13 = vadd.f32 %v277_v11, %v276_v9  ;;  %v289_v14 = vrot.slane %v288_v12, 4 }
 0x1f4   :  { %v279_v15 = vrot.slane %v278_v13, 2  ;;  %v290_v16 = vadd.f32 %v289_v14, %v288_v12 }
 0x1f6   :  { %v280_v17 = vadd.f32 %v279_v15, %v278_v13  ;;  %v291_v18 = vrot.slane %v290_v16, 2 }
 0x1f8   :  { %v281_v19 = vrot.slane %v280_v17, 1  ;;  %v292_v20 = vadd.f32 %v291_v18, %v290_v16 }
 0x1fa   :  { %v282_v21 = vadd.f32 %v281_v19, %v280_v17  ;;  %v293_v22 = vrot.slane %v292_v20, 1 }
 0x1fc   :  { %v283_v23 = vmul.f32 0.0625, %v282_v21  ;;  %v294_v24 = vadd.f32 %v293_v22, %v292_v20 }
 0x1fe   :  { %v295_v25 = vmul.f32 0.0625, %v294_v24  ;;  %v296_v26 = vmul.f32 %v283_v23, %v283_v23  ;;  %v298_v27 = vsub.f32 %v266_v3, %v283_v23  ;;  %v299_v28 = vsub.f32 %v271_v1, %v283_v23 }
 0x200   :  { %v297_v29 = vsub.f32 %v295_v25, %v296_v26 }
 0x202   :  { %v300_v30 = vadd.f32 1e-05, %v297_v29 }
 0x204   :  { %410 = vrsqrt.f32 %v300_v30 }
 0x20e   :  { %v411_v31 = vpop.eup %410 }
 0x20f   :  { %v302_v33 = vmul.f32 %v411_v31, %v298_v27  ;;  %v303_v34 = vmul.f32 %v411_v31, %v299_v28 }
 0x211   :  { %v311_v36 = vmul.f32 %v336_v32, %v302_v33  ;;  %v312_v37 = vmul.f32 %v336_v32, %v303_v34 }
 0x213   :  { %v320_v38 = vadd.f32 %v337_v35, %v311_v36  ;;  %v321_v39 = vadd.f32 %v337_v35, %v312_v37 }
 0x215   :  { %322 = vst.msk [vmem:[%s551_s9] sm:$0xff] %vm131_vm1, %v320_v38  ;;  %323 = vst.msk [vmem:[%s551_s9 + $0x8] sm:$0xff] %vm131_vm1, %v321_v39 }

// kernel: gdlt_forward.8
= control target key start
LH: loop header
LB: loop body
LE: loop exit
PB: predicated region body
PF: predicated region fallthrough
CT: control target
= control target key end

     0   :  { %s1547_s25 = smov 0   ;;  %s1752_s0 = inlined_call_operand.vmem [shape: f32[2,8,32], index: 0, kind: input, shape index: {}]   ;;  %s1753_s1 = inlined_call_operand.vmem [shape: f32[3,32,32], index: 1, kind: input, shape index: {}]   ;;  %s1754_s2 = inlined_call_operand.vmem [shape: f32[3,1,32], index: 2, kind: input, shape index: {}]   ;;  %s1755_s3 = inlined_call_operand.vmem [shape: f32[32,32], index: 3, kind: input, shape index: {}]   ;;  %s1756_s4 = inlined_call_operand.vmem [shape: f32[1,32], index: 4, kind: input, shape index: {}]   ;;  %s1757_s5 = inlined_call_operand.vmem [shape: f32[1,32], index: 5, kind: input, shape index: {}]   ;;  %s1758_s6 = inlined_call_operand.vmem [shape: f32[1,32], index: 6, kind: input, shape index: {}]   ;;  %s1759_s7 = inlined_call_operand.vmem [shape: f32[32,96], index: 7, kind: input, shape index: {}]   ;;  %s1760_s8 = inlined_call_operand.vmem [shape: f32[1,96], index: 8, kind: input, shape index: {}]   ;;  %s1761_s9 = inlined_call_operand.vmem [shape: f32[96,32], index: 9, kind: input, shape index: {}]   ;;  %s1762_s10 = inlined_call_operand.vmem [shape: f32[1,32], index: 10, kind: input, shape index: {}]   ;;  %s1763_s11 = inlined_call_operand.vmem [shape: f32[1,32], index: 11, kind: input, shape index: {}]   ;;  %s1764_s12 = inlined_call_operand.vmem [shape: f32[1,32], index: 12, kind: input, shape index: {}]   ;;  %s1765_s13 = inlined_call_operand.vmem [shape: f32[2,8,32], index: 13, kind: output, shape index: {}]  }
   0x1 LB: > { %s1227_s26 = sadd.s32 4294967295, %s1472_s25   ;;  %p1231_p0 = scmp.ge.s32.totalorder %s1472_s25, 1  ;;  %s1472_s25 = sphi %s1547_s25, %s23_s25  }
   0x2   : > { %p386_p1 = scmp.lt.s32.totalorder %s1472_s25, 3 }
   0x4   : > { %p387_p2 = pnand %p1231_p0, %p386_p1 }
   0x5   : > { %v442_v0 = vld [vmem:[%s1753_s1] sm:$0xff] (!%p387_p2)  ;;  %v443_v1 = vld [vmem:[%s1753_s1 + $0x8] sm:$0xff] (!%p387_p2)  ;;  %v444_v2 = vld [vmem:[%s1753_s1 + $0x10] sm:$0xff] (!%p387_p2)  ;;  %v1474_v3 = vmov (!%p387_p2), 0.0|0.0   ;;  %vm1475_vm0 = vmmov (!%p387_p2), 0   ;;  %v1476_v6 = vmov (!%p387_p2), 0.0  }
   0x6   : > { %390 = sbr.rel (%p387_p2) target bundleno = 2257 (0x8d1), region = 72  ;;  %1399 = vmatprep.subr.bf16.mxu1 (!%p387_p2), %v1474_v3  ;;  %v1400_v4 = vpack.c.bf16 (!%p387_p2), %v443_v1, %v442_v0  ;;  %v445_v5 = vld [vmem:[%s1753_s1 + $0x18] sm:$0xff] (!%p387_p2)  ;;  %1315 = vmatprep.mubr.msk.f32.mxu1 (!%p387_p2), %vm1475_vm0, %v1476_v6  ;;  %p428_p3 = scmp.lt.s32.totalorder (!%p387_p2), %s1227_s26, 1  ;;  %v1236_v8 = vld [vmem:[%s1753_s1 + $0x20] sm:$0xff] (!%p387_p2)  ;;  %v1237_v9 = vld [vmem:[%s1753_s1 + $0x28] sm:$0xff] (!%p387_p2)  ;;  %vm453_vm1 = vcmask (!%p387_p2), 261120  }
   0x7   : > { %1411 = vmatprep.subr.bf16.mxu0 (!%p387_p2), %v1474_v3  ;;  %1337 = vmatprep.mubr.msk.f32.mxu0 (!%p387_p2), %vm1475_vm0, %v1476_v6  ;;  %v1403_v7 = vpack.c.bf16 (!%p387_p2), %v445_v5, %v444_v2  ;;  %v1406_v11 = vpack.c.bf16 (!%p387_p2), %v1237_v9, %v1236_v8  ;;  %v1238_v12 = vld [vmem:[%s1753_s1 + $0x30] sm:$0xff] (!%p387_p2)  ;;  %v1239_v13 = vld [vmem:[%s1753_s1 + $0x38] sm:$0xff] (!%p387_p2)  ;;  %v1241_v17 = vld [vmem:[%s1754_s2 + $0x1] ss:$0 sm:$0xff] (!%p387_p2)  ;;  %vm770_vm2 = vcmask (!%p387_p2), 64512   ;;  %vm1069_vm3 = vcmask (!%p387_p2), 785408  }
   0x8   : > { %1401 = vmatpush3.bf16.msra.mxu1 (!%p387_p2), %v1400_v4  ;;  %v1409_v14 = vpack.c.bf16 (!%p387_p2), %v1239_v13, %v1238_v12  ;;  %v1234_v19 = vld [vmem:[%s1754_s2] ss:$0 sm:$0xff] (!%p387_p2)  ;;  %v1244_v24 = vld [vmem:[%s1753_s1 + $0x48] sm:$0xff] (!%p387_p2)  ;;  %v1245_v25 = vld [vmem:[%s1753_s1 + $0x50] sm:$0xff] (!%p387_p2) }
   0x9   : > { %1402 = vmatprep.subr.bf16.mxu1 (!%p387_p2), %v1474_v3  ;;  %v1243_v23 = vld [vmem:[%s1753_s1 + $0x40] sm:$0xff] (!%p387_p2)  ;;  %v1246_v27 = vld [vmem:[%s1753_s1 + $0x58] sm:$0xff] (!%p387_p2)  ;;  %v438_v43 = vld [vmem:[%s1755_s3 + $0x8] sm:$0xff] (!%p387_p2) }
   0xa   : > { %v1412_v26 = vpack.c.bf16 (!%p387_p2), %v1244_v24, %v1243_v23  ;;  %v1415_v28 = vpack.c.bf16 (!%p387_p2), %v1246_v27, %v1245_v25  ;;  %v1248_v39 = vld [vmem:[%s1754_s2 + $0x2] ss:$0 sm:$0xff] (!%p387_p2)  ;;  %v439_v44 = vld [vmem:[%s1755_s3 + $0x10] sm:$0xff] (!%p387_p2)  ;;  %v440_v46 = vld [vmem:[%s1755_s3 + $0x18] sm:$0xff] (!%p387_p2) }
   0xb   : > { %v437_v42 = vld [vmem:[%s1755_s3] sm:$0xff] (!%p387_p2)  ;;  %v1421_v47 = vpack.c.bf16 (!%p387_p2), %v440_v46, %v439_v44  ;;  %v966_v1 = vld [vmem:[%s1759_s7 + $0x8] sm:$0xff] (!%p387_p2)  ;;  %v967_v4 = vld [vmem:[%s1759_s7 + $0x10] sm:$0xff] (!%p387_p2) }
   0xc   : > { %1404 = vmatpush3.bf16.msra.mxu1 (!%p387_p2), %v1403_v7  ;;  %1413 = vmatpush3.bf16.msra.mxu0 (!%p387_p2), %v1412_v26  ;;  %v1418_v45 = vpack.c.bf16 (!%p387_p2), %v438_v43, %v437_v42  ;;  %v1253_v53 = vld [vmem:[%s1756_s4] ss:$0 sm:$0xff] (!%p387_p2)  ;;  %v968_v5 = vld [vmem:[%s1759_s7 + $0x18] sm:$0xff] (!%p387_p2)  ;;  %v1051_v8 = vld [vmem:[%s1761_s9 + $0x8] sm:$0xff] (!%p387_p2) }
   0xd   : > { %s1767_s26 = smov (!%p428_p3, %s1227_s26), 1  ;;  %1405 = vmatprep.subr.bf16.mxu1 %v1474_v3  ;;  %1414 = vmatprep.subr.bf16.mxu0 %v1474_v3  ;;  %v965_v0 = vld [vmem:[%s1759_s7] sm:$0xff]  ;;  %v1052_v9 = vld [vmem:[%s1761_s9 + $0x10] sm:$0xff] }
   0xe   : > { %s1232_s22 = sshll.u32 %s1767_s26, 3  ;;  %v1424_v2 = vpack.c.bf16 %v966_v1, %v965_v0  ;;  %v1050_v7 = vld [vmem:[%s1761_s9] sm:$0xff] }
   0xf   : > { %s431_s27 = scalar_lea.vmem %s1752_s0, %s1232_s22  ;;  %v1054_v13 = vld [vmem:[%s1761_s9 + $0x20] sm:$0xff]  ;;  %s435_s15 = scalar_lea.vmem %s1765_s13, %s1232_s22 }
  0x10   : > { %v1588_v10 = vld [vmem:[%s431_s27] sm:$0xff]  ;;  %1416 = vmatpush3.bf16.msra.mxu0 %v1415_v28 }
  0x11   : > { %1316 = vmatmul.mubr.msk.f32.vlgmr.msra.gmra.mrb[0].mxu1 %vm453_vm1, %v1588_v10  ;;  %1417 = vmatprep.subr.bf16.mxu0 %v1474_v3  ;;  %v1255_v26 = vld [vmem:[%s1757_s5] ss:$0 sm:$0xff] }
  0x12   : > { %1407 = vmatpush3.bf16.msra.mxu1 %v1406_v11  ;;  %1326 = vmatprep.mubr.msk.f32.mxu1 %vm1475_vm0, %v1476_v6  ;;  %v1053_v11 = vld [vmem:[%s1761_s9 + $0x18] sm:$0xff]  ;;  %v1256_v28 = vld [vmem:[%s1758_s6] ss:$0 sm:$0xff] }
  0x13   : > { %1408 = vmatprep.subr.bf16.mxu1 %v1474_v3  ;;  %1338 = vmatmul.mubr.msk.f32.vlgmr.msra.gmra.mrb[0].mxu0 %vm453_vm1, %v1588_v10  ;;  %v1433_v12 = vpack.c.bf16 %v1053_v11, %v1052_v9 }
  0x14   : > { %1358 = vmatprep.mubr.msk.f32.mxu0 %vm1475_vm0, %v1476_v6  ;;  %1419 = vmatpush3.bf16.msra.mxu0 %v1418_v45 }
  0x15   : > { %1420 = vmatprep.subr.bf16.mxu0 %v1474_v3 }
  0x16   : > { %1410 = vmatpush3.bf16.msra.mxu1 %v1409_v14  ;;  %v1055_v14 = vld [vmem:[%s1761_s9 + $0x28] sm:$0xff] }
  0x17   : > { %1340 = vmatprep.subr.mxu1 %v1476_v6 }
  0x18   : > { %1422 = vmatpush3.bf16.msra.mxu0 %v1421_v47 }
  0x19   : > { %1327 = vmatmul.mubr.msk.f32.vlgmr.msra.gmra.mrb[2].mxu1 %vm453_vm1, %v1588_v10  ;;  %1429 = vmatprep.subr.bf16.mxu0 %v1474_v3 }
  0x1a   : > { %1342 = vmatprep.mubr.msk.f32.mxu1 %vm1475_vm0, %v1476_v6 }
  0xe4   : > { %v523_v15 = vpop.f32.mrb[0].mxu1 }
  0xe5   : > { %v1317_v16 = vpop.f32.mrb[1].mxu1  ;;  %v524_v22 = vadd.f32 %v1234_v19, %v523_v15  ;;  %v1436_v15 = vpack.c.bf16 %v1055_v14, %v1054_v13  ;;  %v1058_v19 = vld [vmem:[%s1761_s9 + $0x40] sm:$0xff] }
  0xe6   : > { %v689_v38 = vpop.f32.mrb[0].mxu0  ;;  %v1056_v16 = vld [vmem:[%s1761_s9 + $0x30] sm:$0xff] }
  0xe7   : > { %v1339_v40 = vpop.f32.mrb[1].mxu0  ;;  %v690_v41 = vadd.f32 %v1248_v39, %v689_v38  ;;  %v1259_v38 = vld [vmem:[%s1762_s10] ss:$0 sm:$0xff] }
  0xec   : > { %v606_v18 = vpop.f32.mrb[2].mxu1 }
  0xed   : > { %v607_v20 = vadd.f32 %v1241_v17, %v606_v18  ;;  %v1328_v21 = vpop.f32.mrb[3].mxu1  ;;  %v1057_v17 = vld [vmem:[%s1761_s9 + $0x38] sm:$0xff] }
  0xee   : > { %v1439_v18 = vpack.c.bf16 %v1057_v17, %v1056_v16 }
  0xef   : > { %1341 = vmatpush3.xpose.msk.msra.mxu1 %vm453_vm1, %v607_v20  ;;  %v1059_v20 = vld [vmem:[%s1761_s9 + $0x48] sm:$0xff] }
  0xf0   : > { %1345 = vmatprep.subr.mxu1 %v1476_v6  ;;  %v1442_v21 = vpack.c.bf16 %v1059_v20, %v1058_v19 }
  0xf2   : > { %1343 = vmatmul.mubr.msk.f32.vlgmr.msra.gmra.mrb[4].mxu1 %vm453_vm1, %v524_v22 }
  0xf3   : > { %1347 = vmatprep.mubr.msk.f32.mxu1 %vm1475_vm0, %v1476_v6  ;;  %1346 = vmatpush3.msra.mxu1 %v690_v41 }
  0xf4   : > { %1423 = vmatprep.subr.bf16.mxu1 %v1474_v3 }
 0x1c5   : > { %v765_v29 = vpop.f32.mrb[4].mxu1 }
 0x1c6   : > { %v769_v30 = vmul.f32 0.17677669, %v765_v29  ;;  %v1344_v31 = vpop.f32.mrb[5].mxu1 }
 0x1c7   : > { %v1061_v31 = vld [vmem:[%s1761_s9 + $0x58] sm:$0xff] }
 0x1c8   : > { %v771_v32 = vsel %vm770_vm2, %v769_v30, -inf }
 0x1c9   : > { %772 = vmax.xlane.f32.xlu0 %v771_v32 }
 0x256   : > { %v773_v33 = vpop.xlane.xlu0 %772 }
 0x257   : > { %v774_v34 = vsub.f32 %v769_v30, %v773_v33  ;;  %v1257_v33 = vld [vmem:[%s1760_s8] ss:$0 sm:$0xff] }
 0x259   : > { %v775_v35 = vmul.f32 1.442695, %v774_v34 }
 0x25b   : > { %1458 = vpow2.f32 %v775_v35 }
 0x265   : > { %v1459_v36 = vpop.eup %1458 }
 0x266   : > { %v777_v37 = vsel %vm770_vm2, %v1459_v36, 0.0 }
 0x267   : > { %778 = vadd.xlane.f32.xlu0 %v777_v37 }
 0x2f4   : > { %v779_v48 = vpop.xlane.xlu0 %778 }
 0x2f5   : > { %1460 = vrcp.f32 %v779_v48 }
 0x2ff   : > { %v1461_v49 = vpop.eup %1460 }
 0x300   : > { %v781_v50 = vmul.f32 %v1461_v49, %v1459_v36 }
 0x302   : > { %1348 = vmatmul.mubr.msk.f32.vlgmr.msra.gmra.mrb[6].mxu1 %vm770_vm2, %v781_v50 }
 0x303   : > { %1369 = vmatprep.mubr.msk.f32.mxu1 %vm1475_vm0, %v1476_v6  ;;  %1425 = vmatpush3.bf16.msra.mxu1 %v1424_v2 }
 0x304   : > { %1426 = vmatprep.subr.bf16.mxu1 %v1474_v3 }
 0x3d5   : > { %v851_v51 = vpop.f32.mrb[6].mxu1 }
 0x3d6   : > { %v1349_v52 = vpop.f32.mrb[7].mxu1  ;;  %1359 = vmatmul.mubr.msk.f32.vlgmr.msra.gmra.mrb[2].mxu0 %vm453_vm1, %v851_v51 }
 0x3d7   : > { %1396 = vmatprep.mubr.msk.f32.mxu0 %vm1475_vm0, %v1476_v6  ;;  %v1427_v6 = vpack.c.bf16 %v968_v5, %v967_v4 }
 0x3d9   : > { %1428 = vmatpush3.bf16.msra.mxu1 %v1427_v6 }
 0x4a9   : > { %v930_v54 = vpop.f32.mrb[2].mxu0 }
 0x4aa   : > { %v931_v55 = vadd.f32 %v1253_v53, %v930_v54  ;;  %v1360_v56 = vpop.f32.mrb[3].mxu0  ;;  %v1261_v53 = vld [vmem:[%s1763_s11] ss:$0 sm:$0xff] }
 0x4ac   : > { %v934_v57 = vadd.f32 %v931_v55, %v1588_v10  ;;  %v1430_v10 = vpack.c.bf16 %v1051_v8, %v1050_v7  ;;  %v1262_v55 = vld [vmem:[%s1764_s12] ss:$0 sm:$0xff] }
 0x4ae   : > { %v937_v58 = vsel %vm453_vm1, %v934_v57, 0.0  ;;  %1431 = vmatpush3.bf16.msra.mxu0 %v1430_v10 }
 0x4af   : > { %938 = vadd.xlane.f32.xlu1 %v937_v58  ;;  %1432 = vmatprep.subr.bf16.mxu0 %v1474_v3 }
 0x4b2   : > { %1434 = vmatpush3.bf16.msra.mxu0 %v1433_v12 }
 0x4b3   : > { %1435 = vmatprep.subr.bf16.mxu0 %v1474_v3 }
 0x4b6   : > { %1437 = vmatpush3.bf16.msra.mxu0 %v1436_v15 }
 0x4b7   : > { %1438 = vmatprep.subr.bf16.mxu0 %v1474_v3 }
 0x4ba   : > { %1440 = vmatpush3.bf16.msra.mxu0 %v1439_v18 }
 0x4bb   : > { %1441 = vmatprep.subr.bf16.mxu0 %v1474_v3 }
 0x4be   : > { %1443 = vmatpush3.bf16.msra.mxu0 %v1442_v21 }
 0x4bf   : > { %1444 = vmatprep.subr.bf16.mxu0 %v1474_v3  ;;  %v1060_v3 = vld [vmem:[%s1761_s9 + $0x50] sm:$0xff] }
 0x4c0   : > { %v1445_v32 = vpack.c.bf16 %v1061_v31, %v1060_v3 }
 0x4c2   : > { %1446 = vmatpush3.bf16.msra.mxu0 %v1445_v32 }
 0x53c   : > { %v939_v59 = vpop.xlane.xlu1 %938 }
 0x53d   : > { %v941_v60 = vmul.f32 0.03125, %v939_v59 }
 0x53f   : > { %v942_v61 = vsub.f32 %v934_v57, %v941_v60 }
 0x541   : > { %v943_v62 = vmul.f32 %v942_v61, %v942_v61 }
 0x543   : > { %v944_v63 = vsel %vm453_vm1, %v943_v62, 0.0 }
 0x544   : > { %945 = vadd.xlane.f32.xlu1 %v944_v63 }
 0x5d1   : > { %v946_v22 = vpop.xlane.xlu1 %945 }
 0x5d2   : > { %v947_v23 = vmul.f32 0.03125, %v946_v22 }
 0x5d4   : > { %v948_v24 = vadd.f32 1e-05, %v947_v23 }
 0x5d6   : > { %1462 = vrsqrt.f32 %v948_v24 }
 0x5e0   : > { %v1463_v25 = vpop.eup %1462 }
 0x5e1   : > { %v950_v27 = vmul.f32 %v1463_v25, %v942_v61 }
 0x5e3   : > { %v957_v29 = vmul.f32 %v1255_v26, %v950_v27 }
 0x5e5   : > { %v964_v30 = vadd.f32 %v1256_v28, %v957_v29 }
 0x5e7   : > { %1370 = vmatmul.mubr.msk.f32.vlgmr.msra.gmra.mrb[8].mxu1 %vm453_vm1, %v964_v30 }
 0x6ba   : > { %v1045_v34 = vpop.f32.mrb[8].mxu1 }
 0x6bb   : > { %v1046_v35 = vadd.f32 %v1257_v33, %v1045_v34  ;;  %v1371_v36 = vpop.f32.mrb[9].mxu1 }
 0x6bd   : > { %v1049_v37 = vmax.f32 %v1046_v35, 0.0 }
 0x6bf   : > { %1397 = vmatmul.mubr.msk.f32.vlgmr.msra.gmra.mrb[4].mxu0 %vm1069_vm3, %v1049_v37 }
 0x792   : > { %v1139_v39 = vpop.f32.mrb[4].mxu0 }
 0x793   : > { %v1140_v40 = vadd.f32 %v1259_v38, %v1139_v39  ;;  %v1398_v41 = vpop.f32.mrb[5].mxu0 }
 0x795   : > { %v1143_v42 = vadd.f32 %v1140_v40, %v964_v30 }
 0x797   : > { %v1146_v43 = vsel %vm453_vm1, %v1143_v42, 0.0 }
 0x798   : > { %1147 = vadd.xlane.f32.xlu0 %v1146_v43 }
 0x825   : > { %v1148_v44 = vpop.xlane.xlu0 %1147 }
 0x826   : > { %v1149_v45 = vmul.f32 0.03125, %v1148_v44 }
 0x828   : > { %v1150_v46 = vsub.f32 %v1143_v42, %v1149_v45 }
 0x82a   : > { %v1151_v47 = vmul.f32 %v1150_v46, %v1150_v46 }
 0x82c   : > { %v1152_v48 = vsel %vm453_vm1, %v1151_v47, 0.0 }
 0x82d   : > { %1153 = vadd.xlane.f32.xlu1 %v1152_v48 }
 0x8ba   : > { %v1154_v49 = vpop.xlane.xlu1 %1153 }
 0x8bb   : > { %v1155_v50 = vmul.f32 0.03125, %v1154_v49 }
 0x8bd   : > { %v1156_v51 = vadd.f32 1e-05, %v1155_v50 }
 0x8bf   : > { %1464 = vrsqrt.f32 %v1156_v51 }
 0x8c9   : > { %v1465_v52 = vpop.eup %1464 }
 0x8ca   : > { %v1158_v54 = vmul.f32 %v1465_v52, %v1150_v46 }
 0x8cc   : > { %v1165_v56 = vmul.f32 %v1261_v53, %v1158_v54 }
 0x8ce   : > { %v1172_v57 = vadd.f32 %v1262_v55, %v1165_v56 }
 0x8d0   : > { %1173 = vst.msk [vmem:[%s435_s15] sm:$0xff] %vm453_vm1, %v1172_v57 }
 0x8d1 PF: > { %s23_s25 = sadd.s32 1, %s1472_s25  }
 0x8d2   : > { %p20_p4 = scmp.ge.s32.totalorder %s23_s25, 4  }
 0x8d4   :  { %22 = sbr.rel (!%p20_p4) target bundleno = 1 (0x1), region = 106 }

// kernel: gdlt_forward.12
= control target key start
LH: loop header
LB: loop body
LE: loop exit
PB: predicated region body
PF: predicated region fallthrough
CT: control target
= control target key end

     0   :  { %vm17_vm0 = vcmask 261120   ;;  %s90_s0 = inlined_call_operand.vmem [shape: f32[8,32], index: 0, kind: input, shape index: {}]   ;;  %s91_s1 = inlined_call_operand.vmem [shape: f32[1,32], index: 1, kind: input, shape index: {}]   ;;  %s92_s2 = inlined_call_operand.vmem [shape: f32[1,32], index: 2, kind: input, shape index: {}]   ;;  %s93_s3 = inlined_call_operand.vmem [shape: f32[8,32], index: 3, kind: output, shape index: {}]  }
   0x1   :  { %v14_v0 = vld [vmem:[%s90_s0] sm:$0xff] }
   0x2   :  { %v18_v1 = vsel %vm17_vm0, %v14_v0, 0.0  ;;  %v51_v11 = vld [vmem:[%s91_s1] ss:$0 sm:$0xff] }
   0x3   :  { %19 = vadd.xlane.f32.xlu0 %v18_v1  ;;  %v52_v13 = vld [vmem:[%s92_s2] ss:$0 sm:$0xff] }
  0x90   :  { %v20_v2 = vpop.xlane.xlu0 %19 }
  0x91   :  { %v22_v3 = vmul.f32 0.03125, %v20_v2 }
  0x93   :  { %v23_v4 = vsub.f32 %v14_v0, %v22_v3 }
  0x95   :  { %v24_v5 = vmul.f32 %v23_v4, %v23_v4 }
  0x97   :  { %v25_v6 = vsel %vm17_vm0, %v24_v5, 0.0 }
  0x98   :  { %26 = vadd.xlane.f32.xlu0 %v25_v6 }
 0x125   :  { %v27_v7 = vpop.xlane.xlu0 %26 }
 0x126   :  { %v28_v8 = vmul.f32 0.03125, %v27_v7 }
 0x128   :  { %v29_v9 = vadd.f32 1e-05, %v28_v8 }
 0x12a   :  { %53 = vrsqrt.f32 %v29_v9 }
 0x134   :  { %v54_v10 = vpop.eup %53 }
 0x135   :  { %v31_v12 = vmul.f32 %v54_v10, %v23_v4 }
 0x137   :  { %v38_v14 = vmul.f32 %v51_v11, %v31_v12 }
 0x139   :  { %v45_v15 = vadd.f32 %v52_v13, %v38_v14 }
 0x13b   :  { %46 = vst.msk [vmem:[%s93_s3] sm:$0xff] %vm17_vm0, %v45_v15 }

// kernel: gdlt_forward.13
= control target key start
LH: loop header
LB: loop body
LE: loop exit
PB: predicated region body
PF: predicated region fallthrough
CT: control target
= control target key end

     0   :  { %vm22_vm0 = vcmask 257024   ;;  %v140_v8 = vmov 0   ;;  %v59_v24 = vlaneseq  ;;  %vm69_vm1 = vcmask 1041409   ;;  %s188_s0 = inlined_call_operand.vmem [shape: f32[2,4,32], index: 0, kind: input, shape index: {}]   ;;  %s189_s1 = inlined_call_operand.vmem [shape: f32[4,32], index: 1, kind: input, shape index: {}]   ;;  %s190_s2 = inlined_call_operand.vmem [shape: f32[1,4], index: 2, kind: input, shape index: {}]   ;;  %s191_s3 = inlined_call_operand.vmem [shape: f32[1,4], index: 3, kind: input, shape index: {}]   ;;  %s192_s4 = inlined_call_operand.vmem [shape: f32[2,1], index: 4, kind: output, shape index: {}]  }
   0x1   :  { %v17_v0 = vld [vmem:[%s188_s0] sm:$0xf]  ;;  %v18_v2 = vld [vmem:[%s188_s0 + $0x4] sm:$0xf]  ;;  %128 = vset.pattern.permute.xlu1 %v140_v8  ;;  %129 = vset.pattern.permute.xlu0 %v140_v8  ;;  %vm72_vm2 = vcmask 25600   ;;  %vm119_vm3 = vcmask 1024  }
   0x2   :  { %v19_v1 = vld [vmem:[%s189_s1] sm:$0xf]  ;;  %v60_v25 = vand.u32 127, %v59_v24  ;;  %v62_v26 = vshrl.u32 %v59_v24, 7 }
   0x3   :  { %v20_v3 = vmul.f32 %v19_v1, %v17_v0  ;;  %v21_v4 = vmul.f32 %v19_v1, %v18_v2  ;;  %v125_v5 = vld [vmem:[%s190_s2] ss:$0 sm:$0xff] }
   0x4   :  { %36 = vbcast.lane.b32.xlu1 %v125_v5, 256  ;;  %v63_v27 = vsub.s32 %v60_v25, %v62_v26  ;;  %v84_v35 = vsub.s32 1, %v62_v26  ;;  %v80_v36 = vsub.s32 0, %v62_v26  ;;  %v126_v46 = vld [vmem:[%s191_s3] ss:$0 sm:$0xff] }
   0x5   :  { %v23_v6 = vsel %vm22_vm0, %v20_v3, 0.0  ;;  %v26_v7 = vsel %vm22_vm0, %v21_v4, 0.0 }
   0x6   :  { %24 = vadd.xlane.f32.xlu0 %v23_v6 }
   0xa   :  { %27 = vadd.xlane.f32.xlu0 %v26_v7 }
  0x76   :  { %v37_v9 = vpop.permute.xlu1 %36 }
  0x93   :  { %v25_v10 = vpop.xlane.xlu0 %24 }
  0x94   :  { %v39_v11 = vadd.f32 %v37_v9, %v25_v10 }
  0x96   :  { %v41_v12 = vsub.f32 0.0, %v39_v11 }
  0x97   :  { %v28_v13 = vpop.xlane.xlu0 %27 }
  0x98   :  { %v43_v14 = vmul.f32 1.442695, %v41_v12  ;;  %v40_v15 = vadd.f32 %v37_v9, %v28_v13 }
  0x9a   :  { %130 = vpow2.f32 %v43_v14  ;;  %v42_v16 = vsub.f32 0.0, %v40_v15 }
  0x9c   :  { %v45_v17 = vmul.f32 1.442695, %v42_v16 }
  0x9e   :  { %132 = vpow2.f32 %v45_v17 }
  0xa4   :  { %v131_v18 = vpop.eup %130 }
  0xa5   :  { %v47_v19 = vadd.f32 1.0, %v131_v18 }
  0xa7   :  { %134 = vrcp.f32 %v47_v19 }
  0xa8   :  { %v133_v20 = vpop.eup %132 }
  0xa9   :  { %v48_v21 = vadd.f32 1.0, %v133_v20 }
  0xab   :  { %136 = vrcp.f32 %v48_v21 }
  0xb1   :  { %v135_v22 = vpop.eup %134 }
  0xb2   :  { %54 = vperm.xlu1 %128, %v135_v22  }
  0xb5   :  { %v137_v23 = vpop.eup %136 }
  0xb6   :  { %57 = vperm.xlu0 %129, %v137_v23  }
 0x131   :  { %v55_v28 = vpop.permute.xlu1 %54 }
 0x132   :  { %v64_v30 = vrot.slane %v55_v28, %v63_v27 }
 0x135   :  { %v58_v29 = vpop.permute.xlu0 %57 }
 0x136   :  { %v68_v31 = vrot.slane %v58_v29, %v63_v27 }
 0x138   :  { %v70_v32 = vsel %vm69_vm1, %v68_v31, %v64_v30 }
 0x139   :  { %v73_v33 = vsel %vm72_vm2, %v70_v32, 0.0 }
 0x13a   :  { %74 = vadd.xlane.f32.xlu1 %v73_v33 }
 0x1c7   :  { %v75_v34 = vpop.xlane.xlu1 %74 }
 0x1c8   :  { %138 = vrcp.f32 %v75_v34 }
 0x1d2   :  { %v139_v37 = vpop.eup %138 }
 0x1d3   :  { %v85_v38 = vrot.slane %v139_v37, %v84_v35  ;;  %v81_v39 = vrot.slane %v139_v37, %v80_v36 }
 0x1d5   :  { %v89_v40 = vmul.f32 %v137_v23, %v85_v38  ;;  %v88_v41 = vmul.f32 %v135_v22, %v81_v39 }
 0x1d7   :  { %103 = vperm.xlu0 %129, %v89_v40   ;;  %100 = vperm.xlu1 %128, %v88_v41  }
 0x256   :  { %v104_v42 = vpop.permute.xlu0 %103  ;;  %v101_v43 = vpop.permute.xlu1 %100 }
 0x257   :  { %v112_v44 = vrot.slane %v104_v42, %v63_v27  ;;  %v108_v45 = vrot.slane %v101_v43, %v63_v27 }
 0x259   :  { %v113_v47 = vsel %vm69_vm1, %v112_v44, %v108_v45 }
 0x25a   :  { %v115_v48 = vmul.f32 %v126_v46, %v113_v47 }
 0x25c   :  { %v116_v49 = vsel %vm72_vm2, %v115_v48, 0.0 }
 0x25d   :  { %117 = vadd.xlane.f32.xlu0 %v116_v49 }
 0x2ea   :  { %v118_v50 = vpop.xlane.xlu0 %117 }
 0x2eb   :  { %120 = vst.msk [vmem:[%s192_s4] sm:$0x3] %vm119_vm3, %v118_v50 }

// kernel: gdlt_forward.10
= control target key start
LH: loop header
LB: loop body
LE: loop exit
PB: predicated region body
PF: predicated region fallthrough
CT: control target
= control target key end

     0   :  { %s2776_s0 = inlined_call_operand.vmem [shape: f32[2,4,32], index: 0, kind: input, shape index: {}]   ;;  %s2777_s1 = inlined_call_operand.vmem [shape: f32[2,8,32], index: 1, kind: input, shape index: {}]   ;;  %s2778_s2 = inlined_call_operand.vmem [shape: f32[3,32,32], index: 2, kind: input, shape index: {}]   ;;  %s2779_s3 = inlined_call_operand.vmem [shape: f32[3,1,32], index: 3, kind: input, shape index: {}]   ;;  %s2780_s4 = inlined_call_operand.vmem [shape: f32[32,32], index: 4, kind: input, shape index: {}]   ;;  %s2781_s5 = inlined_call_operand.vmem [shape: f32[1,32], index: 5, kind: input, shape index: {}]   ;;  %s2782_s6 = inlined_call_operand.vmem [shape: f32[1,32], index: 6, kind: input, shape index: {}]   ;;  %s2783_s7 = inlined_call_operand.vmem [shape: f32[1,32], index: 7, kind: input, shape index: {}]   ;;  %s2784_s8 = inlined_call_operand.vmem [shape: f32[3,32,32], index: 8, kind: input, shape index: {}]   ;;  %s2785_s9 = inlined_call_operand.vmem [shape: f32[3,1,32], index: 9, kind: input, shape index: {}]   ;;  %s2786_s10 = inlined_call_operand.vmem [shape: f32[32,32], index: 10, kind: input, shape index: {}]   ;;  %s2787_s11 = inlined_call_operand.vmem [shape: f32[1,32], index: 11, kind: input, shape index: {}]   ;;  %s2788_s12 = inlined_call_operand.vmem [shape: f32[1,32], index: 12, kind: input, shape index: {}]   ;;  %s2789_s13 = inlined_call_operand.vmem [shape: f32[1,32], index: 13, kind: input, shape index: {}]   ;;  %s2790_s14 = inlined_call_operand.vmem [shape: f32[32,96], index: 14, kind: input, shape index: {}]   ;;  %s2791_s15 = inlined_call_operand.vmem [shape: f32[1,96], index: 15, kind: input, shape index: {}]   ;;  %s2792_s16 = inlined_call_operand.vmem [shape: f32[96,32], index: 16, kind: input, shape index: {}]   ;;  %s2793_s17 = inlined_call_operand.vmem [shape: f32[1,32], index: 17, kind: input, shape index: {}]   ;;  %s2794_s18 = inlined_call_operand.vmem [shape: f32[1,32], index: 18, kind: input, shape index: {}]   ;;  %s2795_s19 = inlined_call_operand.vmem [shape: f32[1,32], index: 19, kind: input, shape index: {}]   ;;  %s2796_s20 = inlined_call_operand.vmem [shape: f32[2,4,32], index: 20, kind: output, shape index: {}]  }
   0x1   :  { %2802 = sst [smem:[#allocation2_spill]] %s2776_s0 }
   0x2   :  { %2803 = sst [smem:[#allocation3_spill]] %s2777_s1  ;;  %s2470_s1 = smov 0  }
   0x3   :  { %2804 = sst [smem:[#allocation4_spill]] %s2778_s2 }
   0x4   :  { %2805 = sst [smem:[#allocation5_spill]] %s2779_s3 }
   0x5   :  { %2806 = sst [smem:[#allocation6_spill]] %s2780_s4 }
   0x6 LB: > { %s1982_s22 = sadd.s32 4294967295, %s2360_s1   ;;  %p1986_p0 = scmp.ge.s32.totalorder %s2360_s1, 1  ;;  %s2360_s1 = sphi %s2470_s1, %s30_s1  }
   0x7   : > { %p570_p1 = scmp.lt.s32.totalorder %s2360_s1, 3 }
   0x9   : > { %p571_p2 = pnand %p1986_p0, %p570_p1 }
   0xa   : > { %s2807_s2 = sld [smem:[#allocation4_spill]] (!%p571_p2)  ;;  %v2362_v3 = vmov (!%p571_p2), 0.0|0.0   ;;  %vm2363_vm0 = vmmov (!%p571_p2), 0   ;;  %v2364_v6 = vmov (!%p571_p2), 0.0   ;;  %p630_p3 = scmp.lt.s32.totalorder (!%p571_p2), %s1982_s22, 1  ;;  %vm660_vm1 = vcmask (!%p571_p2), 261120  }
   0xb   : > { %574 = sbr.rel (%p571_p2) target bundleno = 3749 (0xea5), region = 100  ;;  %2257 = vmatprep.subr.bf16.mxu1 (!%p571_p2), %v2362_v3  ;;  %2119 = vmatprep.mubr.msk.f32.mxu1 (!%p571_p2), %vm2363_vm0, %v2364_v6  ;;  %s2808_s3 = sld [smem:[#allocation2_spill]] (!%p571_p2)  ;;  %vm977_vm2 = vcmask (!%p571_p2), 27648   ;;  %vm993_vm3 = vcmask (!%p571_p2), 1043456   ;;  %vm989_vm4 = vcmask (!%p571_p2), 31744   ;;  %vm1149_vm5 = vcmask (!%p571_p2), 257024  }
   0xc   : > { %2269 = vmatprep.subr.bf16.mxu0 (!%p571_p2), %v2362_v3  ;;  %2141 = vmatprep.mubr.msk.f32.mxu0 (!%p571_p2), %vm2363_vm0, %v2364_v6  ;;  %s2809_s21 = sld [smem:[#allocation5_spill]] (!%p571_p2)  ;;  %s2810_s27 = sld [smem:[#allocation6_spill]] (!%p571_p2)  ;;  %v2010_v53 = vld [vmem:[%s2781_s5] ss:$0 sm:$0xff] (!%p571_p2)  ;;  %vm1513_vm6 = vcmask (!%p571_p2), 60416   ;;  %vm1525_vm7 = vcmask (!%p571_p2), 64512  }
   0xd   : > { %s2811_s0 = sld [smem:[#allocation3_spill]] (!%p571_p2)  ;;  %vm1812_vm8 = vcmask (!%p571_p2), 785408  }
  0x10   : > { %v649_v0 = vld [vmem:[%s2807_s2] sm:$0xff] (!%p571_p2)  ;;  %v650_v1 = vld [vmem:[%s2807_s2 + $0x8] sm:$0xff] (!%p571_p2)  ;;  %v651_v2 = vld [vmem:[%s2807_s2 + $0x10] sm:$0xff] (!%p571_p2) }
  0x11   : > { %v2258_v4 = vpack.c.bf16 (!%p571_p2), %v650_v1, %v649_v0  ;;  %v652_v5 = vld [vmem:[%s2807_s2 + $0x18] sm:$0xff] (!%p571_p2)  ;;  %v1992_v8 = vld [vmem:[%s2807_s2 + $0x20] sm:$0xff] (!%p571_p2)  ;;  %v1993_v9 = vld [vmem:[%s2807_s2 + $0x28] sm:$0xff] (!%p571_p2) }
  0x12   : > { %v2261_v7 = vpack.c.bf16 %v652_v5, %v651_v2  ;;  %s2814_s22 = smov (!%p630_p3, %s1982_s22), 1  ;;  %v2264_v11 = vpack.c.bf16 %v1993_v9, %v1992_v8  ;;  %v1994_v12 = vld [vmem:[%s2807_s2 + $0x30] sm:$0xff]  ;;  %v1995_v13 = vld [vmem:[%s2807_s2 + $0x38] sm:$0xff]  ;;  %v1997_v17 = vld [vmem:[%s2809_s21 + $0x1] ss:$0 sm:$0xff] }
  0x13   : > { %2259 = vmatpush3.bf16.msra.mxu1 %v2258_v4  ;;  %s2800_s23 = sshll.u32 %s2814_s22, 2  ;;  %v2267_v14 = vpack.c.bf16 %v1995_v13, %v1994_v12  ;;  %v1990_v19 = vld [vmem:[%s2809_s21] ss:$0 sm:$0xff]  ;;  %v2000_v24 = vld [vmem:[%s2807_s2 + $0x48] sm:$0xff]  ;;  %v2001_v25 = vld [vmem:[%s2807_s2 + $0x50] sm:$0xff]  ;;  %s1988_s4 = sshll.u32 %s2814_s22, 3 }
  0x14   : > { %2260 = vmatprep.subr.bf16.mxu1 %v2362_v3  ;;  %s633_s26 = scalar_lea.vmem %s2808_s3, %s2800_s23  ;;  %v1999_v23 = vld [vmem:[%s2807_s2 + $0x40] sm:$0xff]  ;;  %v2002_v27 = vld [vmem:[%s2807_s2 + $0x58] sm:$0xff]  ;;  %v645_v43 = vld [vmem:[%s2810_s27 + $0x8] sm:$0xff]  ;;  %s637_s24 = scalar_lea.vmem %s2811_s0, %s1988_s4 }
  0x15   : > { %v2511_v10 = vld [vmem:[%s633_s26] sm:$0xf]  ;;  %v2270_v26 = vpack.c.bf16 %v2000_v24, %v1999_v23  ;;  %v2273_v28 = vpack.c.bf16 %v2002_v27, %v2001_v25  ;;  %v646_v44 = vld [vmem:[%s2810_s27 + $0x10] sm:$0xff]  ;;  %v647_v46 = vld [vmem:[%s2810_s27 + $0x18] sm:$0xff]  ;;  %s2812_s0 = sshll.u32 %s2814_s22, 2 }
  0x16   : > { %v2004_v39 = vld [vmem:[%s2809_s21 + $0x2] ss:$0 sm:$0xff]  ;;  %v2279_v47 = vpack.c.bf16 %v647_v46, %v646_v44  ;;  %v2017_v1 = vld [vmem:[%s2784_s8 + $0x28] sm:$0xff]  ;;  %v2019_v9 = vld [vmem:[%s2784_s8 + $0x38] sm:$0xff]  ;;  %s641_s23 = scalar_lea.vmem %s2796_s20, %s2812_s0 }
  0x17   : > { %2262 = vmatpush3.bf16.msra.mxu1 %v2261_v7  ;;  %2271 = vmatpush3.bf16.msra.mxu0 %v2270_v26  ;;  %v644_v42 = vld [vmem:[%s2810_s27] sm:$0xff]  ;;  %v1184_v5 = vld [vmem:[%s2784_s8 + $0x8] sm:$0xff]  ;;  %v2018_v7 = vld [vmem:[%s2784_s8 + $0x30] sm:$0xff] }
  0x18   : > { %2263 = vmatprep.subr.bf16.mxu1 %v2362_v3  ;;  %2272 = vmatprep.subr.bf16.mxu0 %v2362_v3  ;;  %v2276_v45 = vpack.c.bf16 %v645_v43, %v644_v42  ;;  %v2016_v0 = vld [vmem:[%s2784_s8 + $0x20] sm:$0xff]  ;;  %v1186_v12 = vld [vmem:[%s2784_s8 + $0x18] sm:$0xff]  ;;  %v2025_v27 = vld [vmem:[%s2784_s8 + $0x50] sm:$0xff] }
  0x19   : > { %v2288_v2 = vpack.c.bf16 %v2017_v1, %v2016_v0  ;;  %v1183_v4 = vld [vmem:[%s2784_s8] sm:$0xff] }
  0x1a   : > { %2120 = vmatmul.mubr.msk.f32.vlgmr.msra.gmra.mrb[0].mxu1 %vm660_vm1, %v2511_v10  ;;  %v2282_v8 = vpack.c.bf16 %v1184_v5, %v1183_v4  ;;  %v643_v13 = vld [vmem:[%s637_s24] sm:$0xff] }
  0x1b   : > { %2265 = vmatpush3.bf16.msra.mxu1 %v2264_v11  ;;  %2130 = vmatprep.mubr.msk.f32.mxu1 %vm2363_vm0, %v2364_v6  ;;  %v1185_v11 = vld [vmem:[%s2784_s8 + $0x10] sm:$0xff]  ;;  %v2013_v23 = vld [vmem:[%s2783_s7] ss:$0 sm:$0xff] }
  0x1c   : > { %2266 = vmatprep.subr.bf16.mxu1 %v2362_v3  ;;  %2274 = vmatpush3.bf16.msra.mxu0 %v2273_v28  ;;  %v2026_v28 = vld [vmem:[%s2784_s8 + $0x58] sm:$0xff] }
  0x1d   : > { %2275 = vmatprep.subr.bf16.mxu0 %v2362_v3 }
  0x1f   : > { %2268 = vmatpush3.bf16.msra.mxu1 %v2267_v14  ;;  %2142 = vmatmul.mubr.msk.f32.vlgmr.msra.gmra.mrb[0].mxu0 %vm660_vm1, %v2511_v10  ;;  %v2285_v14 = vpack.c.bf16 %v1186_v12, %v1185_v11  ;;  %v1709_v11 = vld [vmem:[%s2790_s14 + $0x8] sm:$0xff] }
  0x20   : > { %2144 = vmatprep.subr.mxu1 %v2364_v6  ;;  %2162 = vmatprep.mubr.msk.f32.mxu0 %vm2363_vm0, %v2364_v6 }
  0x21   : > { %2277 = vmatpush3.bf16.msra.mxu0 %v2276_v45 }
  0x22   : > { %2131 = vmatmul.mubr.msk.f32.vlgmr.msra.gmra.mrb[2].mxu1 %vm660_vm1, %v2511_v10  ;;  %2278 = vmatprep.subr.bf16.mxu0 %v2362_v3 }
  0x23   : > { %2146 = vmatprep.mubr.msk.f32.mxu1 %vm2363_vm0, %v2364_v6 }
  0x25   : > { %2280 = vmatpush3.bf16.msra.mxu0 %v2279_v47 }
  0x26   : > { %2287 = vmatprep.subr.bf16.mxu0 %v2362_v3 }
  0xed   : > { %v730_v15 = vpop.f32.mrb[0].mxu1 }
  0xee   : > { %v2121_v16 = vpop.f32.mrb[1].mxu1  ;;  %v731_v22 = vadd.f32 %v1990_v19, %v730_v15  ;;  %v2012_v19 = vld [vmem:[%s2782_s6] ss:$0 sm:$0xff] }
  0xf2   : > { %v896_v38 = vpop.f32.mrb[0].mxu0 }
  0xf3   : > { %v2143_v40 = vpop.f32.mrb[1].mxu0  ;;  %v897_v41 = vadd.f32 %v2004_v39, %v896_v38  ;;  %v2028_v38 = vld [vmem:[%s2785_s9 + $0x2] ss:$0 sm:$0xff] }
  0xf5   : > { %v813_v18 = vpop.f32.mrb[2].mxu1 }
  0xf6   : > { %v814_v20 = vadd.f32 %v1997_v17, %v813_v18  ;;  %v2132_v21 = vpop.f32.mrb[3].mxu1 }
  0xf7   : > { %v2023_v21 = vld [vmem:[%s2784_s8 + $0x40] sm:$0xff] }
  0xf8   : > { %2145 = vmatpush3.xpose.msk.msra.mxu1 %vm660_vm1, %v814_v20 }
  0xf9   : > { %2149 = vmatprep.subr.mxu1 %v2364_v6 }
  0xfb   : > { %2147 = vmatmul.mubr.msk.f32.vlgmr.msra.gmra.mrb[4].mxu1 %vm660_vm1, %v731_v22  ;;  %v2024_v22 = vld [vmem:[%s2784_s8 + $0x48] sm:$0xff] }
  0xfc   : > { %2151 = vmatprep.mubr.msk.f32.mxu1 %vm2363_vm0, %v2364_v6  ;;  %2150 = vmatpush3.msk.msra.mxu1 %vm993_vm3, %v897_v41  ;;  %v2294_v25 = vpack.c.bf16 %v2024_v22, %v2023_v21  ;;  %v1797_v22 = vld [vmem:[%s2792_s16 + $0x20] sm:$0xff] }
  0xfd   : > { %2281 = vmatprep.subr.bf16.mxu1 %v2362_v3 }
 0x1ce   : > { %v972_v29 = vpop.f32.mrb[4].mxu1 }
 0x1cf   : > { %v976_v30 = vmul.f32 0.17677669, %v972_v29  ;;  %v2148_v31 = vpop.f32.mrb[5].mxu1  ;;  %v2297_v29 = vpack.c.bf16 %v2026_v28, %v2025_v27  ;;  %v1801_v28 = vld [vmem:[%s2792_s16 + $0x40] sm:$0xff] }
 0x1d1   : > { %v978_v32 = vsel %vm977_vm2, %v976_v30, -inf }
 0x1d2   : > { %979 = vmax.xlane.f32.xlu0 %v978_v32 }
 0x25f   : > { %v980_v33 = vpop.xlane.xlu0 %979 }
 0x260   : > { %v981_v34 = vsub.f32 %v976_v30, %v980_v33  ;;  %v2021_v30 = vld [vmem:[%s2785_s9 + $0x1] ss:$0 sm:$0xff] }
 0x262   : > { %v982_v35 = vmul.f32 1.442695, %v981_v34  ;;  %v2014_v34 = vld [vmem:[%s2785_s9] ss:$0 sm:$0xff] }
 0x264   : > { %2340 = vpow2.f32 %v982_v35 }
 0x26e   : > { %v2341_v36 = vpop.eup %2340 }
 0x26f   : > { %v984_v37 = vsel %vm977_vm2, %v2341_v36, 0.0 }
 0x270   : > { %985 = vadd.xlane.f32.xlu0 %v984_v37 }
 0x2fd   : > { %v986_v48 = vpop.xlane.xlu0 %985 }
 0x2fe   : > { %2342 = vrcp.f32 %v986_v48 }
 0x308   : > { %v2343_v49 = vpop.eup %2342 }
 0x309   : > { %v988_v50 = vmul.f32 %v2343_v49, %v2341_v36 }
 0x30b   : > { %2152 = vmatmul.mubr.msk.f32.vlgmr.msra.gmra.mrb[6].mxu1 %vm989_vm4, %v988_v50 }
 0x30c   : > { %2173 = vmatprep.mubr.msk.f32.mxu1 %vm2363_vm0, %v2364_v6  ;;  %2283 = vmatpush3.bf16.msra.mxu1 %v2282_v8 }
 0x30d   : > { %2284 = vmatprep.subr.bf16.mxu1 %v2362_v3 }
 0x310   : > { %2286 = vmatpush3.bf16.msra.mxu1 %v2285_v14  ;;  %v1711_v14 = vld [vmem:[%s2790_s14 + $0x18] sm:$0xff] }
 0x311   : > { %2293 = vmatprep.subr.bf16.mxu1 %v2362_v3 }
 0x3de   : > { %v1063_v51 = vpop.f32.mrb[6].mxu1 }
 0x3df   : > { %v2153_v52 = vpop.f32.mrb[7].mxu1  ;;  %2163 = vmatmul.mubr.msk.f32.vlgmr.msra.gmra.mrb[2].mxu0 %vm660_vm1, %v1063_v51  ;;  %v1178_v51 = vld [vmem:[%s2786_s10] sm:$0xff] }
 0x3e0   : > { %2184 = vmatprep.mubr.msk.f32.mxu0 %vm2363_vm0, %v2364_v6  ;;  %2289 = vmatpush3.bf16.msra.mxu0 %v2288_v2  ;;  %v1179_v52 = vld [vmem:[%s2786_s10 + $0x8] sm:$0xff] }
 0x3e1   : > { %2290 = vmatprep.subr.bf16.mxu0 %v2362_v3 }
 0x4b2   : > { %v1142_v54 = vpop.f32.mrb[2].mxu0 }
 0x4b3   : > { %v1143_v55 = vadd.f32 %v2010_v53, %v1142_v54  ;;  %v2164_v56 = vpop.f32.mrb[3].mxu0  ;;  %v1180_v53 = vld [vmem:[%s2786_s10 + $0x10] sm:$0xff]  ;;  %v2300_v54 = vpack.c.bf16 %v1179_v52, %v1178_v51 }
 0x4b5   : > { %v1146_v57 = vadd.f32 %v1143_v55, %v2511_v10  ;;  %v2291_v10 = vpack.c.bf16 %v2019_v9, %v2018_v7  ;;  %v1181_v55 = vld [vmem:[%s2786_s10 + $0x18] sm:$0xff] }
 0x4b6   : > { %v2303_v56 = vpack.c.bf16 %v1181_v55, %v1180_v53 }
 0x4b7   : > { %v1150_v58 = vsel %vm1149_vm5, %v1146_v57, 0.0  ;;  %2292 = vmatpush3.bf16.msra.mxu0 %v2291_v10 }
 0x4b8   : > { %1151 = vadd.xlane.f32.xlu1 %v1150_v58  ;;  %2299 = vmatprep.subr.bf16.mxu0 %v2362_v3 }
 0x4ba   : > { %2185 = vmatmul.mubr.msk.f32.vlgmr.msra.gmra.mrb[4].mxu0 %vm660_vm1, %v643_v13 }
 0x4bb   : > { %2216 = vmatprep.mubr.msk.f32.mxu0 %vm2363_vm0, %v2364_v6  ;;  %2301 = vmatpush3.bf16.msra.mxu0 %v2300_v54 }
 0x4bc   : > { %2302 = vmatprep.subr.bf16.mxu0 %v2362_v3 }
 0x4bf   : > { %2304 = vmatpush3.bf16.msra.mxu0 %v2303_v56 }
 0x4c0   : > { %2311 = vmatprep.subr.bf16.mxu0 %v2362_v3 }
 0x545   : > { %v1152_v59 = vpop.xlane.xlu1 %1151 }
 0x546   : > { %v1154_v60 = vmul.f32 0.03125, %v1152_v59 }
 0x548   : > { %v1155_v61 = vsub.f32 %v1146_v57, %v1154_v60 }
 0x54a   : > { %v1156_v62 = vmul.f32 %v1155_v61, %v1155_v61 }
 0x54c   : > { %v1157_v63 = vsel %vm1149_vm5, %v1156_v62, 0.0  ;;  %v2033_v62 = vld [vmem:[%s2787_s11] ss:$0 sm:$0xff] }
 0x54d   : > { %1158 = vadd.xlane.f32.xlu1 %v1157_v63 }
 0x58d   : > { %v1349_v31 = vpop.f32.mrb[4].mxu0 }
 0x58e   : > { %v1350_v32 = vadd.f32 %v2021_v30, %v1349_v31  ;;  %v2186_v33 = vpop.f32.mrb[5].mxu0 }
 0x5da   : > { %v1159_v15 = vpop.xlane.xlu1 %1158 }
 0x5db   : > { %v1160_v16 = vmul.f32 0.03125, %v1159_v15 }
 0x5dd   : > { %v1161_v17 = vadd.f32 1e-05, %v1160_v16  ;;  %v1793_v16 = vld [vmem:[%s2792_s16] sm:$0xff] }
 0x5df   : > { %2344 = vrsqrt.f32 %v1161_v17  ;;  %v1794_v17 = vld [vmem:[%s2792_s16 + $0x8] sm:$0xff] }
 0x5e9   : > { %v2345_v18 = vpop.eup %2344 }
 0x5ea   : > { %v1163_v20 = vmul.f32 %v2345_v18, %v1155_v61  ;;  %v1795_v18 = vld [vmem:[%s2792_s16 + $0x10] sm:$0xff] }
 0x5ec   : > { %v1170_v24 = vmul.f32 %v2012_v19, %v1163_v20  ;;  %v2312_v19 = vpack.c.bf16 %v1794_v17, %v1793_v16  ;;  %v1796_v20 = vld [vmem:[%s2792_s16 + $0x18] sm:$0xff] }
 0x5ed   : > { %v2315_v21 = vpack.c.bf16 %v1796_v20, %v1795_v18 }
 0x5ee   : > { %v2635_v26 = vadd.f32 %v2013_v23, %v1170_v24  ;;  %v1798_v23 = vld [vmem:[%s2792_s16 + $0x28] sm:$0xff] }
 0x5ef   : > { %v2318_v24 = vpack.c.bf16 %v1798_v23, %v1797_v22 }
 0x5f0   : > { %2174 = vmatmul.mubr.msk.f32.vlgmr.msra.gmra.mrb[8].mxu1 %vm660_vm1, %v2635_v26 }
 0x5f1   : > { %2295 = vmatpush3.bf16.msra.mxu1 %v2294_v25  ;;  %2195 = vmatprep.mubr.msk.f32.mxu1 %vm2363_vm0, %v2364_v6  ;;  %v1799_v25 = vld [vmem:[%s2792_s16 + $0x30] sm:$0xff] }
 0x5f2   : > { %2296 = vmatprep.subr.bf16.mxu1 %v2362_v3 }
 0x5f5   : > { %2298 = vmatpush3.bf16.msra.mxu1 %v2297_v29  ;;  %v1802_v29 = vld [vmem:[%s2792_s16 + $0x48] sm:$0xff] }
 0x5f6   : > { %2198 = vmatprep.subr.mxu1 %v2364_v6  ;;  %v2324_v30 = vpack.c.bf16 %v1802_v29, %v1801_v28 }
 0x5f8   : > { %2196 = vmatmul.mubr.msk.f32.vlgmr.msra.gmra.mrb[10].mxu1 %vm660_vm1, %v643_v13  ;;  %v1710_v13 = vld [vmem:[%s2790_s14 + $0x10] sm:$0xff] }
 0x5f9   : > { %2200 = vmatprep.mubr.msk.f32.mxu1 %vm2363_vm0, %v2364_v6  ;;  %v2309_v15 = vpack.c.bf16 %v1711_v14, %v1710_v13 }
 0x5fe   : > { %2199 = vmatpush3.xpose.msk.msra.mxu1 %vm660_vm1, %v1350_v32 }
 0x5ff   : > { %2203 = vmatprep.subr.mxu1 %v2364_v6 }
 0x6c3   : > { %v1263_v35 = vpop.f32.mrb[8].mxu1 }
 0x6c4   : > { %v1264_v36 = vadd.f32 %v2014_v34, %v1263_v35  ;;  %v2175_v37 = vpop.f32.mrb[9].mxu1  ;;  %v2035_v35 = vld [vmem:[%s2788_s12] ss:$0 sm:$0xff] }
 0x6c5   : > { %v2036_v37 = vld [vmem:[%s2789_s13] ss:$0 sm:$0xff] }
 0x6c6   : > { %2201 = vmatmul.mubr.msk.f32.vlgmr.msra.gmra.mrb[12].mxu1 %vm660_vm1, %v1264_v36 }
 0x6c7   : > { %2205 = vmatprep.mubr.msk.f32.mxu1 %vm2363_vm0, %v2364_v6 }
 0x6cb   : > { %v1432_v39 = vpop.f32.mrb[10].mxu1 }
 0x6cc   : > { %v1433_v40 = vadd.f32 %v2028_v38, %v1432_v39  ;;  %v2197_v41 = vpop.f32.mrb[11].mxu1 }
 0x6ce   : > { %2204 = vmatpush3.msra.mxu1 %v1433_v40  ;;  %v1804_v40 = vld [vmem:[%s2792_s16 + $0x58] sm:$0xff] }
 0x6cf   : > { %2305 = vmatprep.subr.bf16.mxu1 %v2362_v3 }
 0x799   : > { %v1508_v42 = vpop.f32.mrb[12].mxu1 }
 0x79a   : > { %v1512_v43 = vmul.f32 0.17677669, %v1508_v42  ;;  %v2202_v44 = vpop.f32.mrb[13].mxu1  ;;  %v2037_v42 = vld [vmem:[%s2791_s15] ss:$0 sm:$0xff] }
 0x79c   : > { %v1514_v45 = vsel %vm1513_vm6, %v1512_v43, -inf }
 0x79d   : > { %1515 = vmax.xlane.f32.xlu0 %v1514_v45 }
 0x82a   : > { %v1516_v46 = vpop.xlane.xlu0 %1515 }
 0x82b   : > { %v1517_v47 = vsub.f32 %v1512_v43, %v1516_v46 }
 0x82d   : > { %v1518_v48 = vmul.f32 1.442695, %v1517_v47  ;;  %v2039_v47 = vld [vmem:[%s2793_s17] ss:$0 sm:$0xff] }
 0x82f   : > { %2346 = vpow2.f32 %v1518_v48 }
 0x839   : > { %v2347_v49 = vpop.eup %2346 }
 0x83a   : > { %v1520_v50 = vsel %vm1513_vm6, %v2347_v49, 0.0 }
 0x83b   : > { %1521 = vadd.xlane.f32.xlu1 %v1520_v50 }
 0x8c8   : > { %v1522_v57 = vpop.xlane.xlu1 %1521 }
 0x8c9   : > { %2348 = vrcp.f32 %v1522_v57 }
 0x8d3   : > { %v2349_v58 = vpop.eup %2348 }
 0x8d4   : > { %v1524_v59 = vmul.f32 %v2349_v58, %v2347_v49 }
 0x8d6   : > { %2206 = vmatmul.mubr.msk.f32.vlgmr.msra.gmra.mrb[14].mxu1 %vm1525_vm7, %v1524_v59 }
 0x8d7   : > { %2227 = vmatprep.mubr.msk.f32.mxu1 %vm2363_vm0, %v2364_v6 }
 0x9a9   : > { %v1595_v60 = vpop.f32.mrb[14].mxu1 }
 0x9aa   : > { %v2207_v61 = vpop.f32.mrb[15].mxu1  ;;  %2217 = vmatmul.mubr.msk.f32.vlgmr.msra.gmra.mrb[6].mxu0 %vm660_vm1, %v1595_v60 }
 0x9ab   : > { %2254 = vmatprep.mubr.msk.f32.mxu0 %vm2363_vm0, %v2364_v6  ;;  %v1708_v6 = vld [vmem:[%s2790_s14] sm:$0xff]  ;;  %2313 = vmatpush3.bf16.msra.mxu0 %v2312_v19 }
 0x9ac   : > { %v2306_v12 = vpack.c.bf16 %v1709_v11, %v1708_v6  ;;  %2314 = vmatprep.subr.bf16.mxu0 %v2362_v3 }
 0x9ae   : > { %2307 = vmatpush3.bf16.msra.mxu1 %v2306_v12 }
 0x9af   : > { %2308 = vmatprep.subr.bf16.mxu1 %v2362_v3  ;;  %2316 = vmatpush3.bf16.msra.mxu0 %v2315_v21 }
 0x9b0   : > { %2317 = vmatprep.subr.bf16.mxu0 %v2362_v3 }
 0x9b2   : > { %2310 = vmatpush3.bf16.msra.mxu1 %v2309_v15 }
 0x9b3   : > { %2319 = vmatpush3.bf16.msra.mxu0 %v2318_v24 }
 0x9b4   : > { %2320 = vmatprep.subr.bf16.mxu0 %v2362_v3 }
 0xa7d   : > { %v1674_v63 = vpop.f32.mrb[6].mxu0 }
 0xa7e   : > { %v1675_v0 = vadd.f32 %v2033_v62, %v1674_v63  ;;  %v2218_v1 = vpop.f32.mrb[7].mxu0  ;;  %v2041_v62 = vld [vmem:[%s2794_s18] ss:$0 sm:$0xff] }
 0xa80   : > { %v1678_v2 = vadd.f32 %v1675_v0, %v2635_v26  ;;  %v1800_v26 = vld [vmem:[%s2792_s16 + $0x38] sm:$0xff]  ;;  %v2042_v0 = vld [vmem:[%s2795_s19] ss:$0 sm:$0xff] }
 0xa81   : > { %v2321_v27 = vpack.c.bf16 %v1800_v26, %v1799_v25 }
 0xa82   : > { %v1681_v4 = vsel %vm1149_vm5, %v1678_v2, 0.0 }
 0xa83   : > { %1682 = vadd.xlane.f32.xlu0 %v1681_v4  ;;  %2322 = vmatpush3.bf16.msra.mxu0 %v2321_v27 }
 0xa84   : > { %2323 = vmatprep.subr.bf16.mxu0 %v2362_v3 }
 0xa87   : > { %2325 = vmatpush3.bf16.msra.mxu0 %v2324_v30 }
 0xa88   : > { %2326 = vmatprep.subr.bf16.mxu0 %v2362_v3  ;;  %v1803_v3 = vld [vmem:[%s2792_s16 + $0x50] sm:$0xff] }
 0xa89   : > { %v2327_v41 = vpack.c.bf16 %v1804_v40, %v1803_v3 }
 0xa8b   : > { %2328 = vmatpush3.bf16.msra.mxu0 %v2327_v41 }
 0xb10   : > { %v1683_v5 = vpop.xlane.xlu0 %1682 }
 0xb11   : > { %v1684_v7 = vmul.f32 0.03125, %v1683_v5 }
 0xb13   : > { %v1685_v8 = vsub.f32 %v1678_v2, %v1684_v7 }
 0xb15   : > { %v1686_v9 = vmul.f32 %v1685_v8, %v1685_v8 }
 0xb17   : > { %v1687_v10 = vsel %vm1149_vm5, %v1686_v9, 0.0 }
 0xb18   : > { %1688 = vadd.xlane.f32.xlu1 %v1687_v10 }
 0xba5   : > { %v1689_v31 = vpop.xlane.xlu1 %1688 }
 0xba6   : > { %v1690_v32 = vmul.f32 0.03125, %v1689_v31 }
 0xba8   : > { %v1691_v33 = vadd.f32 1e-05, %v1690_v32 }
 0xbaa   : > { %2350 = vrsqrt.f32 %v1691_v33 }
 0xbb4   : > { %v2351_v34 = vpop.eup %2350 }
 0xbb5   : > { %v1693_v36 = vmul.f32 %v2351_v34, %v1685_v8 }
 0xbb7   : > { %v1700_v38 = vmul.f32 %v2035_v35, %v1693_v36 }
 0xbb9   : > { %v1707_v39 = vadd.f32 %v2036_v37, %v1700_v38 }
 0xbbb   : > { %2228 = vmatmul.mubr.msk.f32.vlgmr.msra.gmra.mrb[16].mxu1 %vm660_vm1, %v1707_v39 }
 0xc8e   : > { %v1788_v43 = vpop.f32.mrb[16].mxu1 }
 0xc8f   : > { %v1789_v44 = vadd.f32 %v2037_v42, %v1788_v43  ;;  %v2229_v45 = vpop.f32.mrb[17].mxu1 }
 0xc91   : > { %v1792_v46 = vmax.f32 %v1789_v44, 0.0 }
 0xc93   : > { %2255 = vmatmul.mubr.msk.f32.vlgmr.msra.gmra.mrb[8].mxu0 %vm1812_vm8, %v1792_v46 }
 0xd66   : > { %v1882_v48 = vpop.f32.mrb[8].mxu0 }
 0xd67   : > { %v1883_v49 = vadd.f32 %v2039_v47, %v1882_v48  ;;  %v2256_v50 = vpop.f32.mrb[9].mxu0 }
 0xd69   : > { %v1886_v51 = vadd.f32 %v1883_v49, %v1707_v39 }
 0xd6b   : > { %v1889_v52 = vsel %vm1149_vm5, %v1886_v51, 0.0 }
 0xd6c   : > { %1890 = vadd.xlane.f32.xlu0 %v1889_v52 }
 0xdf9   : > { %v1891_v53 = vpop.xlane.xlu0 %1890 }
 0xdfa   : > { %v1892_v54 = vmul.f32 0.03125, %v1891_v53 }
 0xdfc   : > { %v1893_v55 = vsub.f32 %v1886_v51, %v1892_v54 }
 0xdfe   : > { %v1894_v56 = vmul.f32 %v1893_v55, %v1893_v55 }
 0xe00   : > { %v1895_v57 = vsel %vm1149_vm5, %v1894_v56, 0.0 }
 0xe01   : > { %1896 = vadd.xlane.f32.xlu1 %v1895_v57 }
 0xe8e   : > { %v1897_v58 = vpop.xlane.xlu1 %1896 }
 0xe8f   : > { %v1898_v59 = vmul.f32 0.03125, %v1897_v58 }
 0xe91   : > { %v1899_v60 = vadd.f32 1e-05, %v1898_v59 }
 0xe93   : > { %2352 = vrsqrt.f32 %v1899_v60 }
 0xe9d   : > { %v2353_v61 = vpop.eup %2352 }
 0xe9e   : > { %v1901_v63 = vmul.f32 %v2353_v61, %v1893_v55 }
 0xea0   : > { %v1908_v1 = vmul.f32 %v2041_v62, %v1901_v63 }
 0xea2   : > { %v1915_v2 = vadd.f32 %v2042_v0, %v1908_v1 }
 0xea4   : > { %1916 = vst.msk [vmem:[%s641_s23] sm:$0xf] %vm1149_vm5, %v1915_v2 }
 0xea5 PF: > { %s30_s1 = sadd.s32 1, %s2360_s1  }
 0xea6   : > { %p27_p4 = scmp.ge.s32.totalorder %s30_s1, 4  }
 0xea8   :  { %29 = sbr.rel (!%p27_p4) target bundleno = 6 (0x6), region = 141 }

</bundles_post_ra>
